<compile_context>
chip_gen: v6e
topology: v6e:2x2x1
jax: 0.10.0
libtpu: 0.0.40
codegen_flags: <defaults>
</compile_context>

<pallas_src>
import functools

import jax
import jax.numpy as jnp
from jax.experimental import pallas as pl
from jax.experimental.pallas import tpu as pltpu

LANE = 128


def _round_up(x, m):
    return (x + m - 1) // m * m


def _pick_row_tile(H, W, N, Cin_p, Cout_p, bytes_per_el=2,
                   vmem_budget=12 * 1024 * 1024, min_steps=4):
    """Pick TH = output rows per grid step.

    Guarantees: TH divides H; prefers (TH*(W+2)) % 8 == 0 (sublane-dense
    stores); double-buffered in/out tiles + weights + f32 accumulator fit
    `vmem_budget`; and N*(H//TH) >= min_steps grid steps when possible
    (megacore feed + pipeline depth).
    """
    Wp = W + 2

    def vmem_bytes(th):
        m = th * Wp
        t_in = _round_up((th + 2) * Wp + 2, 8)
        return (2 * t_in * Cin_p * bytes_per_el          # double-buffered input tile
                + 2 * m * Cout_p * bytes_per_el          # double-buffered output tile
                + 2 * 9 * Cin_p * Cout_p * bytes_per_el  # double-buffered weights
                + m * Cout_p * 4)                        # f32 accumulator

    divisors = [d for d in range(1, H + 1) if H % d == 0]
    cands = [d for d in divisors
             if (d * Wp) % 8 == 0 and vmem_bytes(d) <= vmem_budget]
    if not cands:
        cands = [d for d in divisors if vmem_bytes(d) <= vmem_budget] or [1]
    cands.sort()
    th = cands[-1]
    while N * (H // th) < min_steps:
        smaller = [d for d in cands if d < th]
        if not smaller:
            break
        th = smaller[-1]
    return th


def _conv_bn_relu_kernel(x_ref, w_ref, bias_ref, o_ref, *, M, Wp):
    """One grid step = one row-tile of one batch element.

    x_ref:    (1, 1, T_in, Cin_p)   flattened zero-padded NHWC row-tile (+halo)
    w_ref:    (9, Cin_p, Cout_p)    per-tap weights with BN scale folded in
    bias_ref: (1, Cout_p)           folded BN bias = beta - mean * scale
    o_ref:    (1, 1, M, Cout_p)     lane-dense output slab (M = TH * Wp rows;
                                    2 junk columns per row dropped by wrapper)
    """
    cout_p = o_ref.shape[-1]
    acc = jnp.zeros((M, cout_p), jnp.float32)
    for dy in range(3):
        for dx in range(3):
            s = dy * Wp + dx
            a = x_ref[0, 0, s:s + M, :]               # contiguous ref-sliced load
            acc += jnp.dot(a, w_ref[dy * 3 + dx],
                           preferred_element_type=jnp.float32)
    out = jnp.maximum(acc + bias_ref[...], 0.0)       # fused BN bias + ReLU (f32)
    o_ref[0, 0] = out.astype(o_ref.dtype)


def conv_norm_activ(x_nchw, weight_oihw, gamma, beta, running_mean, running_var,
                    eps=1e-5, compute_dtype=jnp.bfloat16):
    """ConvNormActiv forward: conv3x3(pad=1, stride=1, bias=False) + BN(eval) + ReLU.

    x_nchw:      (N, Cin, H, W)
    weight_oihw: (Cout, Cin, 3, 3)
    returns:     (N, Cout, H, W) float32
    """
    N, Cin, H, W = x_nchw.shape
    Cout = weight_oihw.shape[0]
    Cin_p = _round_up(Cin, LANE)
    Cout_p = _round_up(Cout, LANE)
    Hp, Wp = H + 2, W + 2

    # ---- BN folding (inference): y = scale*conv(x,w) + bias -> fold scale into w.
    scale = gamma / jnp.sqrt(running_var + eps)                        # (Cout,)
    bias = (beta - running_mean * scale).astype(jnp.float32)           # (Cout,)

    # ---- tiling.
    TH = _pick_row_tile(H, W, N, Cin_p, Cout_p,
                        bytes_per_el=jnp.dtype(compute_dtype).itemsize)
    R = H // TH
    M = TH * Wp                                   # output rows per grid step
    T_in = _round_up((TH + 2) * Wp + 2, 8)        # input rows per step (halo incl.)

    # ---- layout plumbing: NCHW -> flattened, padded NHWC row tiles (+halo).
    x_nhwc = jnp.transpose(x_nchw, (0, 2, 3, 1))
    x_pad = jnp.pad(x_nhwc, ((0, 0), (1, 1), (1, 1), (0, Cin_p - Cin)))
    x_flat = x_pad.astype(compute_dtype).reshape(N, Hp * Wp, Cin_p)
    tail = (R - 1) * TH * Wp + T_in - Hp * Wp
    if tail > 0:
        x_flat = jnp.pad(x_flat, ((0, 0), (0, tail), (0, 0)))
    x_tiles = jnp.stack(
        [x_flat[:, r * TH * Wp: r * TH * Wp + T_in, :] for r in range(R)], axis=1)

    # ---- OIHW -> (9, Cin_p, Cout_p), BN scale folded, channel-padded.
    w_hwio = jnp.transpose(weight_oihw, (2, 3, 1, 0)) * scale[None, None, None, :]
    w_hwio = jnp.pad(w_hwio, ((0, 0), (0, 0), (0, Cin_p - Cin), (0, Cout_p - Cout)))
    w_taps = w_hwio.reshape(9, Cin_p, Cout_p).astype(compute_dtype)

    bias_p = jnp.pad(bias, (0, Cout_p - Cout)).reshape(1, Cout_p)

    kernel = functools.partial(_conv_bn_relu_kernel, M=M, Wp=Wp)

    out_tiles = pl.pallas_call(
        kernel,
        out_shape=jax.ShapeDtypeStruct((N, R, M, Cout_p), compute_dtype),
        grid_spec=pltpu.PrefetchScalarGridSpec(
            num_scalar_prefetch=0,
            grid=(N, R),
            in_specs=[
                pl.BlockSpec((1, 1, T_in, Cin_p), lambda n, r: (n, r, 0, 0)),
                pl.BlockSpec((9, Cin_p, Cout_p), lambda n, r: (0, 0, 0)),
                pl.BlockSpec((1, Cout_p), lambda n, r: (0, 0)),
            ],
            out_specs=pl.BlockSpec((1, 1, M, Cout_p), lambda n, r: (n, r, 0, 0)),
        ),
        compiler_params=pltpu.CompilerParams(
            dimension_semantics=("parallel", "parallel")),
    )(x_tiles, w_taps, bias_p)

    # Drop the 2 junk columns per row (dx overhang), channel padding, back to
    # NCHW f32 in one fused XLA pass.
    out = out_tiles.reshape(N, R, TH, Wp, Cout_p)[:, :, :, :W, :Cout]
    out = out.reshape(N, H, W, Cout).astype(jnp.float32)
    return jnp.transpose(out, (0, 3, 1, 2))


def _reference(x_nchw, weight_oihw, gamma, beta, running_mean, running_var, eps=1e-5):
    """Pure-JAX f32 reference of the same forward pass."""
    out = jax.lax.conv_general_dilated(
        x_nchw.astype(jnp.float32),
        weight_oihw.astype(jnp.float32),
        window_strides=(1, 1),
        padding=((1, 1), (1, 1)),
        dimension_numbers=("NCHW", "OIHW", "NCHW"),
    )
    scale = (gamma / jnp.sqrt(running_var + eps)).reshape(1, -1, 1, 1)
    bias = (beta - running_mean * gamma / jnp.sqrt(running_var + eps)).reshape(1, -1, 1, 1)
    return jnp.maximum(out * scale + bias, 0.0)


if __name__ == "__main__":
    # Small shapes: batch=2, in_channels=4, out_channels=8, spatial=16x16.
    N, Cin, Cout, H, W = 2, 4, 8, 16, 16

    key = jax.random.PRNGKey(0)
    k_x, k_w, k_g, k_b, k_m, k_v = jax.random.split(key, 6)

    x = jax.random.normal(k_x, (N, Cin, H, W), dtype=jnp.float32)
    weight = jax.random.normal(k_w, (Cout, Cin, 3, 3), dtype=jnp.float32) * 0.1
    gamma = 1.0 + 0.1 * jax.random.normal(k_g, (Cout,), dtype=jnp.float32)
    beta = 0.1 * jax.random.normal(k_b, (Cout,), dtype=jnp.float32)
    running_mean = 0.1 * jax.random.normal(k_m, (Cout,), dtype=jnp.float32)
    running_var = jnp.abs(1.0 + 0.1 * jax.random.normal(k_v, (Cout,), dtype=jnp.float32))

    ref = _reference(x, weight, gamma, beta, running_mean, running_var)

    # Exact-math path (f32 MXU operands + f32 output): tight tolerance.
    out_f32 = jax.block_until_ready(
        conv_norm_activ(x, weight, gamma, beta, running_mean, running_var,
                        compute_dtype=jnp.float32))
    assert out_f32.shape == (N, Cout, H, W)
    assert jnp.allclose(out_f32, ref, atol=1e-4, rtol=1e-4), "f32 path mismatch vs reference"

    # Fast path (bf16 operands + bf16 output store, f32 accumulation): loose tolerance.
    out_bf16 = jax.block_until_ready(
        conv_norm_activ(x, weight, gamma, beta, running_mean, running_var))
    assert out_bf16.shape == (N, Cout, H, W)
    assert jnp.allclose(out_bf16, ref, atol=5e-2, rtol=5e-2), "bf16 path mismatch vs reference"

    print("KERNEL_OK")
</pallas_src>

<mosaic_0001>
module attributes {stable_mosaic.version = 11 : i64} {
  func.func @_conv_bn_relu_kernel(%arg0: i32, %arg1: i32, %arg2: memref<1x1x184x128xf32, #tpu.memory_space<vmem>>, %arg3: memref<9x128x128xf32, #tpu.memory_space<vmem>>, %arg4: memref<1x128xf32, #tpu.memory_space<vmem>>, %arg5: memref<1x1x144x128xf32, #tpu.memory_space<vmem>>) attributes {dimension_semantics = [#tpu.dimension_semantics<parallel>, #tpu.dimension_semantics<parallel>], iteration_bounds = array<i64: 2, 2>, scalar_prefetch = 0 : i64, scratch_operands = 0 : i64, tpu.core_type = #tpu.core_type<tc>, window_params = [{transform_indices = @transform_0, window_bounds = array<i64: 1, 1, 184, 128>}, {pipeline_mode = #tpu.pipeline_mode<synchronous>, transform_indices = @transform_1, window_bounds = array<i64: 9, 128, 128>}, {pipeline_mode = #tpu.pipeline_mode<synchronous>, transform_indices = @transform_2, window_bounds = array<i64: 1, 128>}, {transform_indices = @transform_3, window_bounds = array<i64: 1, 1, 144, 128>}]} {
    %cst = arith.constant 0.000000e+00 : f32
    %0 = vector.broadcast %cst : f32 to vector<144x128xf32>
    %c0 = arith.constant 0 : index
    %c0_0 = arith.constant 0 : index
    %c0_1 = arith.constant 0 : index
    %c0_2 = arith.constant 0 : index
    %1 = vector.load %arg2[%c0, %c0_0, %c0_1, %c0_2] : memref<1x1x184x128xf32, #tpu.memory_space<vmem>>, vector<1x1x144x128xf32>
    %2 = vector.shape_cast %1 : vector<1x1x144x128xf32> to vector<144x128xf32>
    %c0_3 = arith.constant 0 : index
    %c0_4 = arith.constant 0 : index
    %c0_5 = arith.constant 0 : index
    %3 = vector.load %arg3[%c0_3, %c0_4, %c0_5] : memref<9x128x128xf32, #tpu.memory_space<vmem>>, vector<1x128x128xf32>
    %4 = vector.shape_cast %3 : vector<1x128x128xf32> to vector<128x128xf32>
    %cst_6 = arith.constant dense<0.000000e+00> : vector<144x128xf32>
    %5 = tpu.matmul %2, %4, %cst_6 {dimension_numbers = #tpu.dot_dimension_numbers<[1], [0], [0], [1], [0, 0, 1, 1], [], []>} : vector<144x128xf32>, vector<128x128xf32>, vector<144x128xf32> -> vector<144x128xf32>
    %6 = arith.addf %0, %5 : vector<144x128xf32>
    %c0_7 = arith.constant 0 : index
    %c0_8 = arith.constant 0 : index
    %c1 = arith.constant 1 : index
    %c0_9 = arith.constant 0 : index
    %7 = vector.load %arg2[%c0_7, %c0_8, %c1, %c0_9] : memref<1x1x184x128xf32, #tpu.memory_space<vmem>>, vector<1x1x144x128xf32>
    %8 = vector.shape_cast %7 : vector<1x1x144x128xf32> to vector<144x128xf32>
    %c1_10 = arith.constant 1 : index
    %c0_11 = arith.constant 0 : index
    %c0_12 = arith.constant 0 : index
    %9 = vector.load %arg3[%c1_10, %c0_11, %c0_12] : memref<9x128x128xf32, #tpu.memory_space<vmem>>, vector<1x128x128xf32>
    %10 = vector.shape_cast %9 : vector<1x128x128xf32> to vector<128x128xf32>
    %cst_13 = arith.constant dense<0.000000e+00> : vector<144x128xf32>
    %11 = tpu.matmul %8, %10, %cst_13 {dimension_numbers = #tpu.dot_dimension_numbers<[1], [0], [0], [1], [0, 0, 1, 1], [], []>} : vector<144x128xf32>, vector<128x128xf32>, vector<144x128xf32> -> vector<144x128xf32>
    %12 = arith.addf %6, %11 : vector<144x128xf32>
    %c0_14 = arith.constant 0 : index
    %c0_15 = arith.constant 0 : index
    %c2 = arith.constant 2 : index
    %c0_16 = arith.constant 0 : index
    %13 = vector.load %arg2[%c0_14, %c0_15, %c2, %c0_16] : memref<1x1x184x128xf32, #tpu.memory_space<vmem>>, vector<1x1x144x128xf32>
    %14 = vector.shape_cast %13 : vector<1x1x144x128xf32> to vector<144x128xf32>
    %c2_17 = arith.constant 2 : index
    %c0_18 = arith.constant 0 : index
    %c0_19 = arith.constant 0 : index
    %15 = vector.load %arg3[%c2_17, %c0_18, %c0_19] : memref<9x128x128xf32, #tpu.memory_space<vmem>>, vector<1x128x128xf32>
    %16 = vector.shape_cast %15 : vector<1x128x128xf32> to vector<128x128xf32>
    %cst_20 = arith.constant dense<0.000000e+00> : vector<144x128xf32>
    %17 = tpu.matmul %14, %16, %cst_20 {dimension_numbers = #tpu.dot_dimension_numbers<[1], [0], [0], [1], [0, 0, 1, 1], [], []>} : vector<144x128xf32>, vector<128x128xf32>, vector<144x128xf32> -> vector<144x128xf32>
    %18 = arith.addf %12, %17 : vector<144x128xf32>
    %c0_21 = arith.constant 0 : index
    %c0_22 = arith.constant 0 : index
    %c18 = arith.constant 18 : index
    %c0_23 = arith.constant 0 : index
    %19 = vector.load %arg2[%c0_21, %c0_22, %c18, %c0_23] : memref<1x1x184x128xf32, #tpu.memory_space<vmem>>, vector<1x1x144x128xf32>
    %20 = vector.shape_cast %19 : vector<1x1x144x128xf32> to vector<144x128xf32>
    %c3 = arith.constant 3 : index
    %c0_24 = arith.constant 0 : index
    %c0_25 = arith.constant 0 : index
    %21 = vector.load %arg3[%c3, %c0_24, %c0_25] : memref<9x128x128xf32, #tpu.memory_space<vmem>>, vector<1x128x128xf32>
    %22 = vector.shape_cast %21 : vector<1x128x128xf32> to vector<128x128xf32>
    %cst_26 = arith.constant dense<0.000000e+00> : vector<144x128xf32>
    %23 = tpu.matmul %20, %22, %cst_26 {dimension_numbers = #tpu.dot_dimension_numbers<[1], [0], [0], [1], [0, 0, 1, 1], [], []>} : vector<144x128xf32>, vector<128x128xf32>, vector<144x128xf32> -> vector<144x128xf32>
    %24 = arith.addf %18, %23 : vector<144x128xf32>
    %c0_27 = arith.constant 0 : index
    %c0_28 = arith.constant 0 : index
    %c19 = arith.constant 19 : index
    %c0_29 = arith.constant 0 : index
    %25 = vector.load %arg2[%c0_27, %c0_28, %c19, %c0_29] : memref<1x1x184x128xf32, #tpu.memory_space<vmem>>, vector<1x1x144x128xf32>
    %26 = vector.shape_cast %25 : vector<1x1x144x128xf32> to vector<144x128xf32>
    %c4 = arith.constant 4 : index
    %c0_30 = arith.constant 0 : index
    %c0_31 = arith.constant 0 : index
    %27 = vector.load %arg3[%c4, %c0_30, %c0_31] : memref<9x128x128xf32, #tpu.memory_space<vmem>>, vector<1x128x128xf32>
    %28 = vector.shape_cast %27 : vector<1x128x128xf32> to vector<128x128xf32>
    %cst_32 = arith.constant dense<0.000000e+00> : vector<144x128xf32>
    %29 = tpu.matmul %26, %28, %cst_32 {dimension_numbers = #tpu.dot_dimension_numbers<[1], [0], [0], [1], [0, 0, 1, 1], [], []>} : vector<144x128xf32>, vector<128x128xf32>, vector<144x128xf32> -> vector<144x128xf32>
    %30 = arith.addf %24, %29 : vector<144x128xf32>
    %c0_33 = arith.constant 0 : index
    %c0_34 = arith.constant 0 : index
    %c20 = arith.constant 20 : index
    %c0_35 = arith.constant 0 : index
    %31 = vector.load %arg2[%c0_33, %c0_34, %c20, %c0_35] : memref<1x1x184x128xf32, #tpu.memory_space<vmem>>, vector<1x1x144x128xf32>
    %32 = vector.shape_cast %31 : vector<1x1x144x128xf32> to vector<144x128xf32>
    %c5 = arith.constant 5 : index
    %c0_36 = arith.constant 0 : index
    %c0_37 = arith.constant 0 : index
    %33 = vector.load %arg3[%c5, %c0_36, %c0_37] : memref<9x128x128xf32, #tpu.memory_space<vmem>>, vector<1x128x128xf32>
    %34 = vector.shape_cast %33 : vector<1x128x128xf32> to vector<128x128xf32>
    %cst_38 = arith.constant dense<0.000000e+00> : vector<144x128xf32>
    %35 = tpu.matmul %32, %34, %cst_38 {dimension_numbers = #tpu.dot_dimension_numbers<[1], [0], [0], [1], [0, 0, 1, 1], [], []>} : vector<144x128xf32>, vector<128x128xf32>, vector<144x128xf32> -> vector<144x128xf32>
    %36 = arith.addf %30, %35 : vector<144x128xf32>
    %c0_39 = arith.constant 0 : index
    %c0_40 = arith.constant 0 : index
    %c36 = arith.constant 36 : index
    %c0_41 = arith.constant 0 : index
    %37 = vector.load %arg2[%c0_39, %c0_40, %c36, %c0_41] : memref<1x1x184x128xf32, #tpu.memory_space<vmem>>, vector<1x1x144x128xf32>
    %38 = vector.shape_cast %37 : vector<1x1x144x128xf32> to vector<144x128xf32>
    %c6 = arith.constant 6 : index
    %c0_42 = arith.constant 0 : index
    %c0_43 = arith.constant 0 : index
    %39 = vector.load %arg3[%c6, %c0_42, %c0_43] : memref<9x128x128xf32, #tpu.memory_space<vmem>>, vector<1x128x128xf32>
    %40 = vector.shape_cast %39 : vector<1x128x128xf32> to vector<128x128xf32>
    %cst_44 = arith.constant dense<0.000000e+00> : vector<144x128xf32>
    %41 = tpu.matmul %38, %40, %cst_44 {dimension_numbers = #tpu.dot_dimension_numbers<[1], [0], [0], [1], [0, 0, 1, 1], [], []>} : vector<144x128xf32>, vector<128x128xf32>, vector<144x128xf32> -> vector<144x128xf32>
    %42 = arith.addf %36, %41 : vector<144x128xf32>
    %c0_45 = arith.constant 0 : index
    %c0_46 = arith.constant 0 : index
    %c37 = arith.constant 37 : index
    %c0_47 = arith.constant 0 : index
    %43 = vector.load %arg2[%c0_45, %c0_46, %c37, %c0_47] : memref<1x1x184x128xf32, #tpu.memory_space<vmem>>, vector<1x1x144x128xf32>
    %44 = vector.shape_cast %43 : vector<1x1x144x128xf32> to vector<144x128xf32>
    %c7 = arith.constant 7 : index
    %c0_48 = arith.constant 0 : index
    %c0_49 = arith.constant 0 : index
    %45 = vector.load %arg3[%c7, %c0_48, %c0_49] : memref<9x128x128xf32, #tpu.memory_space<vmem>>, vector<1x128x128xf32>
    %46 = vector.shape_cast %45 : vector<1x128x128xf32> to vector<128x128xf32>
    %cst_50 = arith.constant dense<0.000000e+00> : vector<144x128xf32>
    %47 = tpu.matmul %44, %46, %cst_50 {dimension_numbers = #tpu.dot_dimension_numbers<[1], [0], [0], [1], [0, 0, 1, 1], [], []>} : vector<144x128xf32>, vector<128x128xf32>, vector<144x128xf32> -> vector<144x128xf32>
    %48 = arith.addf %42, %47 : vector<144x128xf32>
    %c0_51 = arith.constant 0 : index
    %c0_52 = arith.constant 0 : index
    %c38 = arith.constant 38 : index
    %c0_53 = arith.constant 0 : index
    %49 = vector.load %arg2[%c0_51, %c0_52, %c38, %c0_53] : memref<1x1x184x128xf32, #tpu.memory_space<vmem>>, vector<1x1x144x128xf32>
    %50 = vector.shape_cast %49 : vector<1x1x144x128xf32> to vector<144x128xf32>
    %c8 = arith.constant 8 : index
    %c0_54 = arith.constant 0 : index
    %c0_55 = arith.constant 0 : index
    %51 = vector.load %arg3[%c8, %c0_54, %c0_55] : memref<9x128x128xf32, #tpu.memory_space<vmem>>, vector<1x128x128xf32>
    %52 = vector.shape_cast %51 : vector<1x128x128xf32> to vector<128x128xf32>
    %cst_56 = arith.constant dense<0.000000e+00> : vector<144x128xf32>
    %53 = tpu.matmul %50, %52, %cst_56 {dimension_numbers = #tpu.dot_dimension_numbers<[1], [0], [0], [1], [0, 0, 1, 1], [], []>} : vector<144x128xf32>, vector<128x128xf32>, vector<144x128xf32> -> vector<144x128xf32>
    %54 = arith.addf %48, %53 : vector<144x128xf32>
    %c0_57 = arith.constant 0 : index
    %c0_58 = arith.constant 0 : index
    %55 = vector.load %arg4[%c0_57, %c0_58] : memref<1x128xf32, #tpu.memory_space<vmem>>, vector<1x128xf32>
    %56 = vector.broadcast %55 : vector<1x128xf32> to vector<144x128xf32>
    %57 = arith.addf %54, %56 : vector<144x128xf32>
    %cst_59 = arith.constant 0.000000e+00 : f32
    %58 = vector.broadcast %cst_59 : f32 to vector<144x128xf32>
    %59 = arith.maximumf %57, %58 : vector<144x128xf32>
    %c0_60 = arith.constant 0 : index
    %c0_61 = arith.constant 0 : index
    %c0_62 = arith.constant 0 : index
    %c0_63 = arith.constant 0 : index
    %60 = vector.load %arg5[%c0_60, %c0_61, %c0_62, %c0_63] : memref<1x1x144x128xf32, #tpu.memory_space<vmem>>, vector<1x1x144x128xf32>
    %61 = vector.shape_cast %60 : vector<1x1x144x128xf32> to vector<144x128xf32>
    %62 = vector.shape_cast %59 : vector<144x128xf32> to vector<1x1x144x128xf32>
    tpu.vector_store %arg5[%c0_60, %c0_61, %c0_62, %c0_63], %62 {strides = array<i32>} : memref<1x1x144x128xf32, #tpu.memory_space<vmem>>, vector<1x1x144x128xf32>,
    return
  }
  func.func @transform_0(%arg0: i32, %arg1: i32) -> (i32, i32, i32, i32) {
    %c0_i32 = arith.constant 0 : i32
    %c0_i32_0 = arith.constant 0 : i32
    %c0_i32_1 = arith.constant 0 : i32
    return %arg0, %arg1, %c0_i32, %c0_i32_0 : i32, i32, i32, i32
  }
  func.func @transform_1(%arg0: i32, %arg1: i32) -> (i32, i32, i32) {
    %c0_i32 = arith.constant 0 : i32
    %c0_i32_0 = arith.constant 0 : i32
    %c0_i32_1 = arith.constant 0 : i32
    %c0_i32_2 = arith.constant 0 : i32
    return %c0_i32, %c0_i32_0, %c0_i32_1 : i32, i32, i32
  }
  func.func @transform_2(%arg0: i32, %arg1: i32) -> (i32, i32) {
    %c0_i32 = arith.constant 0 : i32
    %c0_i32_0 = arith.constant 0 : i32
    %c0_i32_1 = arith.constant 0 : i32
    return %c0_i32, %c0_i32_0 : i32, i32
  }
  func.func @transform_3(%arg0: i32, %arg1: i32) -> (i32, i32, i32, i32) {
    %c0_i32 = arith.constant 0 : i32
    %c0_i32_0 = arith.constant 0 : i32
    %c0_i32_1 = arith.constant 0 : i32
    return %arg0, %arg1, %c0_i32, %c0_i32_0 : i32, i32, i32, i32
  }
}

</mosaic_0001>

<bundles_post_ra>
// kernel: tpu_custom_call.1
= control target key start
LH: loop header
LB: loop body
LE: loop exit
PB: predicated region body
PF: predicated region fallthrough
CT: control target
= control target key end

     0   :  { %s4024_s0 = inlined_call_operand.hbm [shape: f32[2,2,184,128], index: 0, kind: input, shape index: {}]   ;;  %s4025_s1 = inlined_call_operand.hbm [shape: f32[9,128,128], index: 1, kind: input, shape index: {}]   ;;  %s4026_s2 = inlined_call_operand.vmem [shape: f32[1,128], index: 2, kind: input, shape index: {}]   ;;  %s4027_s3 = inlined_call_operand.hbm [shape: f32[2,2,144,128], index: 3, kind: output, shape index: {}]  }
   0x1   :  { %4036 = sst [smem:[#allocation28_spill]] %s4025_s1 }
   0x2   :  { %8 = vsyncpa [#allocation3], 0 }
   0x3   :  { %10 = vsyncpa [#allocation3 + $0x1], 0 }
   0x4   :  { %11 = vsyncpa [#allocation6], 0 }
   0x5   :  { %12 = vsyncpa [#allocation4], 0 }
   0x6   :  { %14 = vsyncpa [#allocation4 + $0x1], 0  ;;  %s3398_s12 = smov 0   ;;  %s3400_s13 = smov 0  }
   0x7   :  { %s3402_s14 = smov 0   ;;  %s3404_s15 = smov 0  }
   0x8   :  { %s3406_s16 = smov 0   ;;  %s3408_s17 = smov 0  }
   0x9   :  { %s3410_s18 = smov 0   ;;  %s3412_s19 = smov 0  }
   0xa LB: > { %4037 = sst [smem:[#allocation11_spill]] %s3341_s12  ;;  %s2234_s20 = sadd.s32 4294967295, %s3369_s19   ;;  %s3369_s19 = sphi %s3412_s19, %s20_s19   ;;  %s3365_s18 = sphi %s3410_s18, %s4082_s18   ;;  %s3361_s17 = sphi %s3408_s17, %s4087_s17   ;;  %s3357_s16 = sphi %s3406_s16, %s4080_s16   ;;  %s3353_s15 = sphi %s3404_s15, %s4086_s15   ;;  %s3349_s14 = sphi %s3402_s14, %s4085_s14   ;;  %s3345_s13 = sphi %s3400_s13, %s4084_s13   ;;  %s3341_s12 = sphi %s3398_s12, %s4083_s12  }
   0xb   : > { %4038 = sst [smem:[#allocation12_spill]] %s3365_s18  ;;  %s2235_s21 = sadd.s32 4294967294, %s3369_s19  }
   0xc   : > { %p54_p0 = scmp.ne.s32.totalorder %s3345_s13, %s3341_s12  ;;  %p3442_p1 = scmp.eq.s32.totalorder %s2234_s20, 0 }
   0xd   : > { %p3446_p2 = scmp.eq.s32.totalorder %s2234_s20, 3  ;;  %p128_p3 = scmp.eq.s32.totalorder %s2235_s21, 3 }
   0xe   : > { %p3452_p4 = por %p3442_p1, %p54_p0  ;;  %p2236_p5 = scmp.ge.s32.totalorder %s3369_s19, 1 }
   0xf   : > { %p3457_p6 = por %p128_p3, %p54_p0  ;;  %p135_p7 = scmp.lt.s32.totalorder %s3369_s19, 5 }
  0x10   : > { %s4041_s24 = scalar_select %p3452_p4, 1, 0 }
  0x11   : > { %s4042_s25 = scalar_select %p3457_p6, 1, 0 }
  0x12   : > { %p3462_p8 = pnand %p2236_p5, %p135_p7  ;;  %s3371_s27 = smov [#allocation5]  }
  0x13   : > { %4043 = sst [smem:[#allocation13_spill]] %s4042_s25  ;;  %s147_s28 = sshll.u32 %s3371_s27, 4  ;;  %s148_s28 = int_to_ptr.vmem [resolvable:$true] %s147_s28 }
  0x14   : > { %p3130_p9 = pneg %p3462_p8  ;;  %s3226_s29 = scalar_lea.vmem %s148_s28, 18432 }
  0x15   : > { %p3227_p12 = scmp.ne.s32.totalorder %s148_s28, %s3226_s29  ;;  %p3234_p3 = scmp.lt.s32.totalorder %s148_s28, %s148_s28 }
  0x16   : > { %p3131_p10 = pnand %p3130_p9, %p3442_p1  ;;  %p3235_p6 = scmp.lt.s32.totalorder %s3226_s29, %s3226_s29 }
  0x18   : > { %p3217_p11 = pneg %p3131_p10  ;;  %p3236_p4 = por %p3235_p6, %p3234_p3 }
  0x1a   : > { %p3229_p13 = pnand %p3227_p12, %p3217_p11 }
  0x1c   : > { %p3230_p0 = pneg %p3229_p13 }
  0x1e   : > { %p3237_p5 = pnand %p3236_p4, %p3230_p0 }
  0x20   : > { %3240 = shalt.err (!%p3237_p5)
}
  0x21   : > { %s4029_s30 = smov 128   ;;  %s4030_s4 = smov 8  }
  0x22   : > { %s4045_s1 = sld [smem:[#allocation28_spill]]  ;;  %s29_s7 = sadd.s32 1, %s3361_s17 }
  0x23   : > { %p30_p4 = scmp.ge.s32.totalorder %s29_s7, 2  ;;  %s32_s8 = sadd.s32 1, %s3365_s18 }
  0x24   : > { %s41_s9 = sadd.s32 1, %s3349_s14  ;;  %p48_p6 = scmp.ne.s32.totalorder %s3349_s14, %s3345_s13 }
  0x25   : > { %s4089_s7 = smov (%p30_p4, %s29_s7), 0  ;;  %s4091_s8 = smov (!%p30_p4, %s32_s8), %s3365_s18 }
  0x26   : > { %4046 = sst [smem:[#allocation14_spill]] %s4089_s7  ;;  %s37_s10 = ssub.s32 %s3361_s17, %s4089_s7 }
  0x27   : > { %p49_p7 = scmp.eq.s32.totalorder %s3369_s19, 0  ;;  %p34_p9 = scmp.ge.s32.totalorder %s4091_s8, 2 }
  0x28   : > { %3133 = dma.hbm_to_vmem [thread:$0]  (!%p3131_p10), %s4045_s1, 18432, %s148_s28, [#allocation6], %s4029_s30, %s4029_s30, %s4030_s4  }
  0x29   : > { %p3489_p11 = por %p3446_p2, %p48_p6  ;;  %p50_p10 = por %p49_p7, %p48_p6 }
  0x2a   : > { %p3143_p12 = scmp.lt.s32.totalorder %s3369_s19, 4  ;;  %s4093_s8 = smov (%p34_p9, %s4091_s8), 0 }
  0x2b   : > { %4048 = sst [smem:[#allocation15_spill]] %s4093_s8  ;;  %s164_s20 = sand.u32 1, %s3349_s14  }
  0x2c   : > { %s3116_s21 = smul.u32 23, %s3361_s17  ;;  %s36_s27 = ssub.s32 %s3365_s18, %s4093_s8 }
  0x2d   : > { %s38_s28 = sor.u32 %s37_s10, %s36_s27  ;;  %s3115_s29 = smul.u32 184, %s164_s20 }
  0x2e   : > { %p39_p13 = scmp.eq.s32.totalorder %s38_s28, 0  ;;  %s3117_s5 = smul.u32 46, %s3365_s18 }
  0x2f   : > { %p3501_p0 = pnand %p3143_p12, %p50_p10  ;;  %s168_s4 = scalar_lea.vmem [#allocation2], %s3115_s29 }
  0x30   : > { %s3506_s23 = scalar_select %p39_p13, %s3349_s14, %s41_s9  }
  0x31   : > { %s174_s30 = sadd.s32 %s3117_s5, %s3116_s21  ;;  %s177_s1 = sshll.u32 %s168_s4, 4  ;;  %s178_s1 = int_to_ptr.vmem [resolvable:$true] %s177_s1 }
  0x32   : > { %s2239_s7 = sshll.u32 %s174_s30, 7  ;;  %s165_s10 = scalar_lea.sflag [#allocation3], %s164_s20 }
  0x33   : > { %s176_s8 = scalar_lea.hbm %s4024_s0, %s2239_s7  ;;  %p3243_p2 = pneg %p3501_p0 }
  0x34   : > { %s3254_s27 = scalar_lea.vmem %s178_s1, 2944  ;;  %s3374_s28 = smov [#allocation2]  }
  0x35   : > { %p3255_p3 = scmp.ne.s32.totalorder %s178_s1, %s3254_s27  ;;  %s3259_s18 = sshll.u32 %s3374_s28, 4  ;;  %s3260_s18 = int_to_ptr.vmem [resolvable:$false] %s3259_s18 }
  0x36   : > { %s3261_s9 = scalar_lea.vmem %s3260_s18, 5888  ;;  %p3262_p6 = scmp.lt.s32.totalorder %s178_s1, %s3260_s18 }
  0x37   : > { %p3257_p5 = pnand %p3255_p3, %p3243_p2  ;;  %p3263_p7 = scmp.lt.s32.totalorder %s3261_s9, %s3254_s27 }
  0x39   : > { %p3258_p4 = pneg %p3257_p5  ;;  %p3264_p9 = por %p3263_p7, %p3262_p6 }
  0x3b   : > { %p3265_p10 = pnand %p3264_p9, %p3258_p4 }
  0x3d   : > { %3268 = shalt.err (!%p3265_p10)
}
  0x3e   : > { %s4050_s12 = smov 8   ;;  %s4051_s25 = smov 128  }
  0x3f   : > { %3137 = dma.hbm_to_vmem [thread:$0]  (!%p3501_p0), %s176_s8, 2944, %s178_s1, %s165_s10, %s4051_s25, %s4051_s25, %s4050_s12  }
  0x40   : > { %189 = sbr.rel (%p3462_p8) target bundleno = 541 (0x21d), region = 32 }
  0x45   : > { %s3521_s30 = sand.u32 1, %s3345_s13   ;;  %p4052_p12 = scmp.ne.s32.totalorder %s4041_s24, 0 }
  0x46   : > { %s3118_s18 = smul.u32 184, %s3521_s30  ;;  %s192_s4 = scalar_lea.sflag [#allocation3], %s3521_s30 }
  0x48   : > { %s3525_s7 = scalar_lea.vmem [#allocation2], %s3118_s18 }
  0x49   : > { %3328 = dma.done.wait (%p4052_p12), %s192_s4, 2944  }
  0x4a   : > { %3330 = vsyncadd (%p4052_p12), %s192_s4, 4294964352 }
  0x4b   : > { %3332 = dma.done.wait (%p3442_p1), [#allocation6], 18432  }
  0x4c   : > { %3334 = vsyncadd (%p3442_p1), [#allocation6], 4294948864  ;;  %v290_v0 = vld [vmem:[#allocation5 + $0xf8] sm:$0xff]  ;;  %v289_v2 = vld [vmem:[#allocation5 + $0xf0] sm:$0xff]  ;;  %s3119_s1 = smul.u32 144, %s3521_s30  ;;  %s2119_s10 = scalar_lea.sflag [#allocation4], %s3521_s30 }
  0x4d   : > { %v255_v1 = vld [vmem:[#allocation5 + $0x78] sm:$0xff]  ;;  %2552 = vmatprep.subr.mxu0 %v290_v0  ;;  %v254_v3 = vld [vmem:[#allocation5 + $0x70] sm:$0xff]  ;;  %v288_v4 = vld [vmem:[#allocation5 + $0xe8] sm:$0xff]  ;;  %s3120_s8 = smul.u32 18, %s3353_s15  ;;  %s3375_s28 = smov [#allocation7]  }
  0x4e   : > { %2611 = vmatprep.subr.mxu1 %v255_v1  ;;  %2553 = vmatpush3.msra.mxu0 %v290_v0  ;;  %v253_v5 = vld [vmem:[#allocation5 + $0x68] sm:$0xff]  ;;  %v287_v6 = vld [vmem:[#allocation5 + $0xe0] sm:$0xff]  ;;  %v286_v8 = vld [vmem:[#allocation5 + $0xd8] sm:$0xff]  ;;  %s3916_s26 = scalar_lea.vmem [#allocation7], %s3119_s1  ;;  %s3121_s20 = smul.u32 36, %s3357_s16 }
  0x4f   : > { %2612 = vmatpush3.msra.mxu1 %v255_v1  ;;  %2554 = vmatprep.subr.mxu0 %v289_v2  ;;  %v252_v7 = vld [vmem:[#allocation5 + $0x60] sm:$0xff]  ;;  %v251_v9 = vld [vmem:[#allocation5 + $0x58] sm:$0xff]  ;;  %v285_v10 = vld [vmem:[#allocation5 + $0xd0] sm:$0xff]  ;;  %s2134_s21 = sshll.u32 %s3916_s26, 4  ;;  %s3273_s9 = sshll.u32 %s3375_s28, 4  ;;  %s3969_s21 = int_to_ptr.vmem [resolvable:$true] %s2134_s21  ;;  %s3274_s9 = int_to_ptr.vmem [resolvable:$false] %s3273_s9 }
  0x50   : > { %2613 = vmatprep.subr.mxu1 %v254_v3  ;;  %2555 = vmatpush3.msra.mxu0 %v289_v2  ;;  %v250_v11 = vld [vmem:[#allocation5 + $0x50] sm:$0xff]  ;;  %v284_v12 = vld [vmem:[#allocation5 + $0xc8] sm:$0xff]  ;;  %v283_v14 = vld [vmem:[#allocation5 + $0xc0] sm:$0xff]  ;;  %s2131_s16 = sadd.s32 %s3121_s20, %s3120_s8  ;;  %s3269_s27 = scalar_lea.vmem %s3969_s21, 2304 }
  0x51   : > { %2614 = vmatpush3.msra.mxu1 %v254_v3  ;;  %2556 = vmatprep.subr.mxu0 %v288_v4  ;;  %v249_v13 = vld [vmem:[#allocation5 + $0x48] sm:$0xff]  ;;  %v248_v15 = vld [vmem:[#allocation5 + $0x40] sm:$0xff]  ;;  %v282_v16 = vld [vmem:[#allocation5 + $0xb8] sm:$0xff]  ;;  %s2243_s15 = sshll.u32 %s2131_s16, 7  ;;  %p3270_p1 = scmp.ne.s32.totalorder %s3969_s21, %s3269_s27 }
  0x52   : > { %2615 = vmatprep.subr.mxu1 %v253_v5  ;;  %2557 = vmatpush3.msra.mxu0 %v288_v4  ;;  %v247_v17 = vld [vmem:[#allocation5 + $0x38] sm:$0xff]  ;;  %v281_v18 = vld [vmem:[#allocation5 + $0xb0] sm:$0xff]  ;;  %v280_v20 = vld [vmem:[#allocation5 + $0xa8] sm:$0xff]  ;;  %s3967_s6 = scalar_lea.hbm %s4027_s3, %s2243_s15  ;;  %s3275_s12 = scalar_lea.vmem %s3274_s9, 4608 }
  0x53   : > { %2616 = vmatpush3.msra.mxu1 %v253_v5  ;;  %2558 = vmatprep.subr.mxu0 %v287_v6  ;;  %v246_v19 = vld [vmem:[#allocation5 + $0x30] sm:$0xff]  ;;  %v245_v21 = vld [vmem:[#allocation5 + $0x28] sm:$0xff]  ;;  %v279_v22 = vld [vmem:[#allocation5 + $0xa0] sm:$0xff]  ;;  %p3271_p8 = pnand %p3270_p1, %p3489_p11  ;;  %p3276_p0 = scmp.lt.s32.totalorder %s3969_s21, %s3274_s9 }
  0x54   : > { %2617 = vmatprep.subr.mxu1 %v252_v7  ;;  %2559 = vmatpush3.msra.mxu0 %v287_v6  ;;  %v244_v23 = vld [vmem:[#allocation5 + $0x20] sm:$0xff]  ;;  %v278_v24 = vld [vmem:[#allocation5 + $0x98] sm:$0xff]  ;;  %v277_v26 = vld [vmem:[#allocation5 + $0x90] sm:$0xff]  ;;  %p3277_p2 = scmp.lt.s32.totalorder %s3275_s12, %s3269_s27 }
  0x55   : > { %2618 = vmatpush3.msra.mxu1 %v252_v7  ;;  %2560 = vmatprep.subr.mxu0 %v286_v8  ;;  %v243_v25 = vld [vmem:[#allocation5 + $0x18] sm:$0xff]  ;;  %v242_v27 = vld [vmem:[#allocation5 + $0x10] sm:$0xff]  ;;  %v276_v28 = vld [vmem:[#allocation5 + $0x88] sm:$0xff]  ;;  %p3272_p13 = pneg %p3271_p8 }
  0x56   : > { %2619 = vmatprep.subr.mxu1 %v251_v9  ;;  %2561 = vmatpush3.msra.mxu0 %v286_v8  ;;  %v241_v29 = vld [vmem:[#allocation5 + $0x8] sm:$0xff]  ;;  %v275_v30 = vld [vmem:[#allocation5 + $0x80] sm:$0xff]  ;;  %v223_v35 = vld [vmem:[%s3525_s7 + $0x8] sm:$0xff]  ;;  %p3278_p3 = por %p3277_p2, %p3276_p0 }
  0x57   : > { %2620 = vmatpush3.msra.mxu1 %v251_v9  ;;  %2562 = vmatprep.subr.mxu0 %v285_v10  ;;  %v240_v31 = vld [vmem:[#allocation5] sm:$0xff]  ;;  %v256_v32 = vld [vmem:[%s3525_s7 + $0x1] sm:$0xff] }
  0x58   : > { %2621 = vmatprep.subr.mxu1 %v250_v11  ;;  %2563 = vmatpush3.msra.mxu0 %v285_v10  ;;  %v222_v33 = vld [vmem:[%s3525_s7] sm:$0xff]  ;;  %v257_v34 = vld [vmem:[%s3525_s7 + $0x9] sm:$0xff]  ;;  %v258_v37 = vld [vmem:[%s3525_s7 + $0x11] sm:$0xff]  ;;  %p3279_p5 = pnand %p3278_p3, %p3272_p13 }
  0x59   : > { %2622 = vmatpush3.msra.mxu1 %v250_v11  ;;  %2564 = vmatprep.subr.mxu0 %v284_v12  ;;  %v635_v36 = vld [vmem:[#allocation5 + $0x178] sm:$0xff]  ;;  %v634_v39 = vld [vmem:[#allocation5 + $0x170] sm:$0xff]  ;;  %v225_v42 = vld [vmem:[%s3525_s7 + $0x18] sm:$0xff] }
  0x5a   : > { %2623 = vmatprep.subr.mxu1 %v249_v13  ;;  %2565 = vmatpush3.msra.mxu0 %v284_v12  ;;  %v224_v38 = vld [vmem:[%s3525_s7 + $0x10] sm:$0xff]  ;;  %v259_v41 = vld [vmem:[%s3525_s7 + $0x19] sm:$0xff]  ;;  %v260_v45 = vld [vmem:[%s3525_s7 + $0x21] sm:$0xff] }
  0x5b   : > { %2624 = vmatpush3.msra.mxu1 %v249_v13  ;;  %2566 = vmatprep.subr.mxu0 %v283_v14  ;;  %v843_v40 = vld [vmem:[#allocation5 + $0x1f8] sm:$0xff]  ;;  %v633_v43 = vld [vmem:[#allocation5 + $0x168] sm:$0xff]  ;;  %v842_v44 = vld [vmem:[#allocation5 + $0x1f0] sm:$0xff] }
  0x5c   : > { %2625 = vmatprep.subr.mxu1 %v248_v15  ;;  %2567 = vmatpush3.msra.mxu0 %v283_v14  ;;  %v226_v46 = vld [vmem:[%s3525_s7 + $0x20] sm:$0xff]  ;;  %v632_v47 = vld [vmem:[#allocation5 + $0x160] sm:$0xff]  ;;  %v227_v49 = vld [vmem:[%s3525_s7 + $0x28] sm:$0xff] }
  0x5d   : > { %2626 = vmatpush3.msra.mxu1 %v248_v15  ;;  %2568 = vmatprep.subr.mxu0 %v282_v16  ;;  %v261_v48 = vld [vmem:[%s3525_s7 + $0x29] sm:$0xff]  ;;  %v841_v50 = vld [vmem:[#allocation5 + $0x1e8] sm:$0xff] }
  0x5e   : > { %2627 = vmatprep.subr.mxu1 %v247_v17  ;;  %2569 = vmatpush3.msra.mxu0 %v282_v16  ;;  %v631_v51 = vld [vmem:[#allocation5 + $0x158] sm:$0xff]  ;;  %v840_v52 = vld [vmem:[#allocation5 + $0x1e0] sm:$0xff]  ;;  %v630_v57 = vld [vmem:[#allocation5 + $0x150] sm:$0xff] }
  0x5f   : > { %2628 = vmatpush3.msra.mxu1 %v247_v17  ;;  %2570 = vmatprep.subr.mxu0 %v281_v18  ;;  %v262_v53 = vld [vmem:[%s3525_s7 + $0x31] sm:$0xff]  ;;  %v263_v55 = vld [vmem:[%s3525_s7 + $0x39] sm:$0xff]  ;;  %v264_v61 = vld [vmem:[%s3525_s7 + $0x41] sm:$0xff] }
  0x60   : > { %2629 = vmatprep.subr.mxu1 %v246_v19  ;;  %2571 = vmatpush3.msra.mxu0 %v281_v18  ;;  %v228_v54 = vld [vmem:[%s3525_s7 + $0x30] sm:$0xff]  ;;  %v229_v56 = vld [vmem:[%s3525_s7 + $0x38] sm:$0xff]  ;;  %v838_v60 = vld [vmem:[#allocation5 + $0x1d0] sm:$0xff] }
  0x61   : > { %2630 = vmatpush3.msra.mxu1 %v246_v19  ;;  %2572 = vmatprep.subr.mxu0 %v280_v20  ;;  %v839_v58 = vld [vmem:[#allocation5 + $0x1d8] sm:$0xff]  ;;  %v629_v59 = vld [vmem:[#allocation5 + $0x148] sm:$0xff]  ;;  %v628_v1 = vld [vmem:[#allocation5 + $0x140] sm:$0xff] }
  0x62   : > { %2631 = vmatprep.subr.mxu1 %v245_v21  ;;  %2573 = vmatpush3.msra.mxu0 %v280_v20  ;;  %v230_v62 = vld [vmem:[%s3525_s7 + $0x40] sm:$0xff]  ;;  %v265_v63 = vld [vmem:[%s3525_s7 + $0x49] sm:$0xff]  ;;  %v266_v5 = vld [vmem:[%s3525_s7 + $0x51] sm:$0xff] }
  0x63   : > { %2632 = vmatpush3.msra.mxu1 %v245_v21  ;;  %2574 = vmatprep.subr.mxu0 %v279_v22  ;;  %v231_v0 = vld [vmem:[%s3525_s7 + $0x48] sm:$0xff]  ;;  %v837_v2 = vld [vmem:[#allocation5 + $0x1c8] sm:$0xff]  ;;  %v836_v4 = vld [vmem:[#allocation5 + $0x1c0] sm:$0xff] }
  0x64   : > { %2633 = vmatprep.subr.mxu1 %v244_v23  ;;  %2575 = vmatpush3.msra.mxu0 %v279_v22  ;;  %v627_v3 = vld [vmem:[#allocation5 + $0x138] sm:$0xff]  ;;  %v267_v7 = vld [vmem:[%s3525_s7 + $0x59] sm:$0xff] }
  0x65   : > { %2634 = vmatpush3.msra.mxu1 %v244_v23  ;;  %2576 = vmatprep.subr.mxu0 %v278_v24  ;;  %v232_v6 = vld [vmem:[%s3525_s7 + $0x50] sm:$0xff]  ;;  %v233_v8 = vld [vmem:[%s3525_s7 + $0x58] sm:$0xff]  ;;  %v626_v10 = vld [vmem:[#allocation5 + $0x130] sm:$0xff] }
  0x66   : > { %2635 = vmatprep.subr.mxu1 %v243_v25  ;;  %2577 = vmatpush3.msra.mxu0 %v278_v24  ;;  %v835_v9 = vld [vmem:[#allocation5 + $0x1b8] sm:$0xff]  ;;  %v834_v11 = vld [vmem:[#allocation5 + $0x1b0] sm:$0xff]  ;;  %v625_v14 = vld [vmem:[#allocation5 + $0x128] sm:$0xff] }
  0x67   : > { %2636 = vmatpush3.msra.mxu1 %v243_v25  ;;  %2578 = vmatprep.subr.mxu0 %v277_v26  ;;  %v268_v12 = vld [vmem:[%s3525_s7 + $0x61] sm:$0xff]  ;;  %v269_v15 = vld [vmem:[%s3525_s7 + $0x69] sm:$0xff]  ;;  %v270_v20 = vld [vmem:[%s3525_s7 + $0x71] sm:$0xff] }
  0x68   : > { %2637 = vmatprep.subr.mxu1 %v242_v27  ;;  %2579 = vmatpush3.msra.mxu0 %v277_v26  ;;  %v234_v13 = vld [vmem:[%s3525_s7 + $0x60] sm:$0xff]  ;;  %v235_v16 = vld [vmem:[%s3525_s7 + $0x68] sm:$0xff]  ;;  %v624_v18 = vld [vmem:[#allocation5 + $0x120] sm:$0xff] }
  0x69   : > { %2638 = vmatpush3.msra.mxu1 %v242_v27  ;;  %2580 = vmatprep.subr.mxu0 %v276_v28  ;;  %v833_v17 = vld [vmem:[#allocation5 + $0x1a8] sm:$0xff]  ;;  %v832_v19 = vld [vmem:[#allocation5 + $0x1a0] sm:$0xff]  ;;  %v623_v22 = vld [vmem:[#allocation5 + $0x118] sm:$0xff] }
  0x6a   : > { %2639 = vmatprep.subr.mxu1 %v241_v29  ;;  %2581 = vmatpush3.msra.mxu0 %v276_v28  ;;  %v236_v21 = vld [vmem:[%s3525_s7 + $0x70] sm:$0xff]  ;;  %v271_v23 = vld [vmem:[%s3525_s7 + $0x79] sm:$0xff]  ;;  %v272_v27 = vld [vmem:[%s3525_s7 + $0x81] sm:$0xff] }
  0x6b   : > { %2640 = vmatpush3.msra.mxu1 %v241_v29  ;;  %2582 = vmatprep.subr.mxu0 %v275_v30  ;;  %v237_v24 = vld [vmem:[%s3525_s7 + $0x78] sm:$0xff]  ;;  %v831_v25 = vld [vmem:[#allocation5 + $0x198] sm:$0xff]  ;;  %v622_v26 = vld [vmem:[#allocation5 + $0x110] sm:$0xff] }
  0x6c   : > { %2641 = vmatprep.subr.mxu1 %v240_v31  ;;  %2583 = vmatpush3.msra.mxu0 %v275_v30  ;;  %v830_v28 = vld [vmem:[#allocation5 + $0x190] sm:$0xff] }
  0x6d   : > { %2584 = vmatprep.mubr.f32.mxu0 %v256_v32  ;;  %2642 = vmatpush3.msra.mxu1 %v240_v31  ;;  %v238_v29 = vld [vmem:[%s3525_s7 + $0x80] sm:$0xff]  ;;  %v273_v30 = vld [vmem:[%s3525_s7 + $0x89] sm:$0xff] }
  0x6e   : > { %2643 = vmatprep.mubr.f32.mxu1 %v222_v33  ;;  %2585 = vmatmul.mubr.f32.vlgmr.msra.gmra.mxu0 %v257_v34  ;;  %v239_v31 = vld [vmem:[%s3525_s7 + $0x88] sm:$0xff]  ;;  %v621_v32 = vld [vmem:[#allocation5 + $0x108] sm:$0xff]  ;;  %v620_v34 = vld [vmem:[#allocation5 + $0x100] sm:$0xff] }
  0x6f   : > { %2644 = vmatmul.mubr.f32.vlgmr.msra.gmra.mxu1 %v223_v35  ;;  %2670 = vmatprep.subr.mxu0 %v635_v36  ;;  %v829_v33 = vld [vmem:[#allocation5 + $0x188] sm:$0xff]  ;;  %v828_v35 = vld [vmem:[#allocation5 + $0x180] sm:$0xff] }
  0x70   : > { %2587 = vmatprep.mubr.f32.mxu0 %v258_v37  ;;  %2671 = vmatpush3.msra.mxu0 %v635_v36  ;;  %v601_v36 = vld [vmem:[%s3525_s7 + $0x2] sm:$0xff]  ;;  %v809_v37 = vld [vmem:[%s3525_s7 + $0x12] sm:$0xff] }
  0x71   : > { %2646 = vmatprep.mubr.f32.mxu1 %v224_v38  ;;  %2672 = vmatprep.subr.mxu0 %v634_v39  ;;  %v602_v38 = vld [vmem:[%s3525_s7 + $0xa] sm:$0xff] }
  0x72   : > { %2729 = vmatprep.subr.mxu1 %v843_v40  ;;  %2588 = vmatmul.mubr.f32.gmra.mxu0 %v259_v41  ;;  %v811_v41 = vld [vmem:[%s3525_s7 + $0x22] sm:$0xff] }
  0x73   : > { %2647 = vmatmul.mubr.f32.gmra.mxu1 %v225_v42  ;;  %2673 = vmatpush3.msra.mxu0 %v634_v39  ;;  %v810_v39 = vld [vmem:[%s3525_s7 + $0x1a] sm:$0xff] }
  0x74   : > { %2730 = vmatpush3.msra.mxu1 %v843_v40  ;;  %2674 = vmatprep.subr.mxu0 %v633_v43  ;;  %v1051_v40 = vld [vmem:[#allocation5 + $0x278] sm:$0xff]  ;;  %v1050_v42 = vld [vmem:[#allocation5 + $0x270] sm:$0xff] }
  0x75   : > { %2731 = vmatprep.subr.mxu1 %v842_v44  ;;  %2675 = vmatpush3.msra.mxu0 %v633_v43  ;;  %v1259_v43 = vld [vmem:[#allocation5 + $0x2f8] sm:$0xff] }
  0x76   : > { %2590 = vmatprep.mubr.f32.mxu0 %v260_v45  ;;  %2649 = vmatprep.mubr.f32.mxu1 %v226_v46  ;;  %v1049_v45 = vld [vmem:[#allocation5 + $0x268] sm:$0xff]  ;;  %v1258_v46 = vld [vmem:[#allocation5 + $0x2f0] sm:$0xff] }
  0x77   : > { %2676 = vmatprep.subr.mxu0 %v632_v47  ;;  %2732 = vmatpush3.msra.mxu1 %v842_v44  ;;  %v812_v44 = vld [vmem:[%s3525_s7 + $0x2a] sm:$0xff] }
  0x78   : > { %2591 = vmatmul.mubr.f32.gmra.mxu0 %v261_v48  ;;  %2650 = vmatmul.mubr.f32.gmra.mxu1 %v227_v49  ;;  %v1048_v48 = vld [vmem:[#allocation5 + $0x260] sm:$0xff] }
  0x79   : > { %2677 = vmatpush3.msra.mxu0 %v632_v47  ;;  %2733 = vmatprep.subr.mxu1 %v841_v50  ;;  %v813_v47 = vld [vmem:[%s3525_s7 + $0x32] sm:$0xff]  ;;  %v814_v49 = vld [vmem:[%s3525_s7 + $0x3a] sm:$0xff] }
  0x7a   : > { %2678 = vmatprep.subr.mxu0 %v631_v51  ;;  %2734 = vmatpush3.msra.mxu1 %v841_v50  ;;  %v1257_v50 = vld [vmem:[#allocation5 + $0x2e8] sm:$0xff] }
  0x7b   : > { %2679 = vmatpush3.msra.mxu0 %v631_v51  ;;  %2735 = vmatprep.subr.mxu1 %v840_v52  ;;  %v1047_v51 = vld [vmem:[#allocation5 + $0x258] sm:$0xff] }
  0x7c   : > { %2593 = vmatprep.mubr.f32.mxu0 %v262_v53  ;;  %2652 = vmatprep.mubr.f32.mxu1 %v228_v54  ;;  %v815_v53 = vld [vmem:[%s3525_s7 + $0x42] sm:$0xff]  ;;  %v816_v54 = vld [vmem:[%s3525_s7 + $0x4a] sm:$0xff] }
  0x7d   : > { %2736 = vmatpush3.msra.mxu1 %v840_v52  ;;  %2594 = vmatmul.mubr.f32.gmra.mxu0 %v263_v55  ;;  %v1256_v52 = vld [vmem:[#allocation5 + $0x2e0] sm:$0xff]  ;;  %v1046_v55 = vld [vmem:[#allocation5 + $0x250] sm:$0xff] }
  0x7e   : > { %2653 = vmatmul.mubr.f32.gmra.mxu1 %v229_v56  ;;  %2680 = vmatprep.subr.mxu0 %v630_v57  ;;  %v1255_v56 = vld [vmem:[#allocation5 + $0x2d8] sm:$0xff] }
  0x7f   : > { %2737 = vmatprep.subr.mxu1 %v839_v58  ;;  %2681 = vmatpush3.msra.mxu0 %v630_v57  ;;  %v1045_v57 = vld [vmem:[#allocation5 + $0x248] sm:$0xff] }
  0x80   : > { %2738 = vmatpush3.msra.mxu1 %v839_v58  ;;  %2682 = vmatprep.subr.mxu0 %v629_v59  ;;  %v1254_v58 = vld [vmem:[#allocation5 + $0x2d0] sm:$0xff] }
  0x81   : > { %2739 = vmatprep.subr.mxu1 %v838_v60  ;;  %2596 = vmatprep.mubr.f32.mxu0 %v264_v61  ;;  %v1044_v61 = vld [vmem:[#allocation5 + $0x240] sm:$0xff] }
  0x82   : > { %2655 = vmatprep.mubr.f32.mxu1 %v230_v62  ;;  %2683 = vmatpush3.msra.mxu0 %v629_v59  ;;  %v817_v59 = vld [vmem:[%s3525_s7 + $0x52] sm:$0xff] }
  0x83   : > { %2740 = vmatpush3.msra.mxu1 %v838_v60  ;;  %2597 = vmatmul.mubr.f32.gmra.mxu0 %v265_v63  ;;  %v818_v60 = vld [vmem:[%s3525_s7 + $0x5a] sm:$0xff]  ;;  %v1043_v63 = vld [vmem:[#allocation5 + $0x238] sm:$0xff] }
  0x84   : > { %2656 = vmatmul.mubr.f32.gmra.mxu1 %v231_v0  ;;  %2684 = vmatprep.subr.mxu0 %v628_v1  ;;  %v1253_v62 = vld [vmem:[#allocation5 + $0x2c8] sm:$0xff]  ;;  %v1252_v0 = vld [vmem:[#allocation5 + $0x2c0] sm:$0xff] }
  0x85   : > { %2741 = vmatprep.subr.mxu1 %v837_v2  ;;  %2685 = vmatpush3.msra.mxu0 %v628_v1  ;;  %v819_v1 = vld [vmem:[%s3525_s7 + $0x62] sm:$0xff] }
  0x86   : > { %2742 = vmatpush3.msra.mxu1 %v837_v2  ;;  %2686 = vmatprep.subr.mxu0 %v627_v3  ;;  %v820_v2 = vld [vmem:[%s3525_s7 + $0x6a] sm:$0xff] }
  0x87   : > { %2743 = vmatprep.subr.mxu1 %v836_v4  ;;  %2599 = vmatprep.mubr.f32.mxu0 %v266_v5  ;;  %v1250_v5 = vld [vmem:[#allocation5 + $0x2b0] sm:$0xff] }
  0x88   : > { %2658 = vmatprep.mubr.f32.mxu1 %v232_v6  ;;  %2687 = vmatpush3.msra.mxu0 %v627_v3  ;;  %v1251_v3 = vld [vmem:[#allocation5 + $0x2b8] sm:$0xff] }
  0x89   : > { %2744 = vmatpush3.msra.mxu1 %v836_v4  ;;  %2600 = vmatmul.mubr.f32.gmra.mxu0 %v267_v7  ;;  %v1042_v4 = vld [vmem:[#allocation5 + $0x230] sm:$0xff]  ;;  %v821_v6 = vld [vmem:[%s3525_s7 + $0x72] sm:$0xff] }
  0x8a   : > { %2659 = vmatmul.mubr.f32.gmra.mxu1 %v233_v8  ;;  %2745 = vmatprep.subr.mxu1 %v835_v9  ;;  %v1041_v7 = vld [vmem:[#allocation5 + $0x228] sm:$0xff] }
  0x8b   : > { %2688 = vmatprep.subr.mxu0 %v626_v10  ;;  %2746 = vmatpush3.msra.mxu1 %v835_v9  ;;  %v822_v8 = vld [vmem:[%s3525_s7 + $0x7a] sm:$0xff] }
  0x8c   : > { %2689 = vmatpush3.msra.mxu0 %v626_v10  ;;  %2747 = vmatprep.subr.mxu1 %v834_v11  ;;  %v1249_v9 = vld [vmem:[#allocation5 + $0x2a8] sm:$0xff]  ;;  %v1040_v10 = vld [vmem:[#allocation5 + $0x220] sm:$0xff] }
  0x8d   : > { %2602 = vmatprep.mubr.f32.mxu0 %v268_v12  ;;  %2661 = vmatprep.mubr.f32.mxu1 %v234_v13  ;;  %v823_v12 = vld [vmem:[%s3525_s7 + $0x82] sm:$0xff] }
  0x8e   : > { %2690 = vmatprep.subr.mxu0 %v625_v14  ;;  %2748 = vmatpush3.msra.mxu1 %v834_v11  ;;  %v1248_v11 = vld [vmem:[#allocation5 + $0x2a0] sm:$0xff]  ;;  %v1039_v13 = vld [vmem:[#allocation5 + $0x218] sm:$0xff] }
  0x8f   : > { %2603 = vmatmul.mubr.f32.gmra.mxu0 %v269_v15  ;;  %2662 = vmatmul.mubr.f32.gmra.mxu1 %v235_v16  ;;  %v1247_v15 = vld [vmem:[#allocation5 + $0x298] sm:$0xff]  ;;  %v1038_v16 = vld [vmem:[#allocation5 + $0x210] sm:$0xff] }
  0x90   : > { %2691 = vmatpush3.msra.mxu0 %v625_v14  ;;  %2749 = vmatprep.subr.mxu1 %v833_v17  ;;  %v824_v14 = vld [vmem:[%s3525_s7 + $0x8a] sm:$0xff] }
  0x91   : > { %2692 = vmatprep.subr.mxu0 %v624_v18  ;;  %2750 = vmatpush3.msra.mxu1 %v833_v17  ;;  %v1246_v17 = vld [vmem:[#allocation5 + $0x290] sm:$0xff] }
  0x92   : > { %2693 = vmatpush3.msra.mxu0 %v624_v18  ;;  %2751 = vmatprep.subr.mxu1 %v832_v19  ;;  %v825_v18 = vld [vmem:[%s3525_s7 + $0x92] sm:$0xff] }
  0x93   : > { %2605 = vmatprep.mubr.f32.mxu0 %v270_v20  ;;  %2664 = vmatprep.mubr.f32.mxu1 %v236_v21  ;;  %v1037_v20 = vld [vmem:[#allocation5 + $0x208] sm:$0xff] }
  0x94   : > { %2694 = vmatprep.subr.mxu0 %v623_v22  ;;  %2752 = vmatpush3.msra.mxu1 %v832_v19  ;;  %v826_v19 = vld [vmem:[%s3525_s7 + $0x9a] sm:$0xff] }
  0x95   : > { %2606 = vmatmul.mubr.f32.gmra.mxu0 %v271_v23  ;;  %2665 = vmatmul.mubr.f32.gmra.mxu1 %v237_v24  ;;  %v1245_v21 = vld [vmem:[#allocation5 + $0x288] sm:$0xff]  ;;  %v1244_v23 = vld [vmem:[#allocation5 + $0x280] sm:$0xff] }
  0x96   : > { %2695 = vmatpush3.msra.mxu0 %v623_v22  ;;  %2753 = vmatprep.subr.mxu1 %v831_v25  ;;  %v1036_v22 = vld [vmem:[#allocation5 + $0x200] sm:$0xff] }
  0x97   : > { %2696 = vmatprep.subr.mxu0 %v622_v26  ;;  %2754 = vmatpush3.msra.mxu1 %v831_v25  ;;  %v1017_v24 = vld [vmem:[%s3525_s7 + $0x13] sm:$0xff] }
  0x98   : > { %2608 = vmatprep.mubr.f32.mxu0 %v272_v27  ;;  %2755 = vmatprep.subr.mxu1 %v830_v28  ;;  %v1225_v25 = vld [vmem:[%s3525_s7 + $0x14] sm:$0xff]  ;;  %v1226_v27 = vld [vmem:[%s3525_s7 + $0x1c] sm:$0xff] }
  0x99   : > { %2667 = vmatprep.mubr.f32.mxu1 %v238_v29  ;;  %2697 = vmatpush3.msra.mxu0 %v622_v26  ;;  %v1018_v26 = vld [vmem:[%s3525_s7 + $0x1b] sm:$0xff]  ;;  %v1019_v29 = vld [vmem:[%s3525_s7 + $0x23] sm:$0xff] }
  0x9a   : > { %2756 = vmatpush3.msra.mxu1 %v830_v28  ;;  %2609 = vmatmul.mubr.f32.gmra.mxu0 %v273_v30  ;;  %v1467_v28 = vld [vmem:[#allocation5 + $0x378] sm:$0xff] }
  0x9b   : > { %2668 = vmatmul.mubr.f32.gmra.mxu1 %v239_v31  ;;  %2698 = vmatprep.subr.mxu0 %v621_v32  ;;  %v3597_v30 = vld [vmem:[%s3525_s7 + $0x24] sm:$0xff] }
  0x9c   : > { %2757 = vmatprep.subr.mxu1 %v829_v33  ;;  %2699 = vmatpush3.msra.mxu0 %v621_v32  ;;  %v1466_v31 = vld [vmem:[#allocation5 + $0x370] sm:$0xff]  ;;  %v1675_v32 = vld [vmem:[#allocation5 + $0x3f8] sm:$0xff] }
  0x9d   : > { %2758 = vmatpush3.msra.mxu1 %v829_v33  ;;  %2700 = vmatprep.subr.mxu0 %v620_v34  ;;  %v1020_v33 = vld [vmem:[%s3525_s7 + $0x2b] sm:$0xff] }
  0x9e   : > { %2759 = vmatprep.subr.mxu1 %v828_v35  ;;  %2701 = vmatpush3.msra.mxu0 %v620_v34  ;;  %v3601_v34 = vld [vmem:[%s3525_s7 + $0x2c] sm:$0xff] }
  0x9f   : > { %2702 = vmatprep.mubr.f32.mxu0 %v601_v36  ;;  %2760 = vmatpush3.msra.mxu1 %v828_v35  ;;  %v1465_v35 = vld [vmem:[#allocation5 + $0x368] sm:$0xff]  ;;  %v1674_v36 = vld [vmem:[#allocation5 + $0x3f0] sm:$0xff] }
  0xa0   : > { %2761 = vmatprep.mubr.f32.mxu1 %v809_v37  ;;  %2703 = vmatmul.mubr.f32.vlgmr.msra.gmra.mxu0 %v602_v38  ;;  %v3607_v38 = vld [vmem:[%s3525_s7 + $0x34] sm:$0xff] }
  0xa1   : > { %2762 = vmatmul.mubr.f32.vlgmr.msra.gmra.mxu1 %v810_v39  ;;  %2788 = vmatprep.subr.mxu0 %v1051_v40 }
  0xa2   : > { %2705 = vmatprep.mubr.f32.mxu0 %v809_v37  ;;  %2789 = vmatpush3.msra.mxu0 %v1051_v40  ;;  %v1021_v37 = vld [vmem:[%s3525_s7 + $0x33] sm:$0xff]  ;;  %v1022_v40 = vld [vmem:[%s3525_s7 + $0x3b] sm:$0xff] }
  0xa3   : > { %2764 = vmatprep.mubr.f32.mxu1 %v811_v41  ;;  %2790 = vmatprep.subr.mxu0 %v1050_v42 }
  0xa4   : > { %2847 = vmatprep.subr.mxu1 %v1259_v43  ;;  %2706 = vmatmul.mubr.f32.gmra.mxu0 %v810_v39  ;;  %v1464_v39 = vld [vmem:[#allocation5 + $0x360] sm:$0xff] }
  0xa5   : > { %2765 = vmatmul.mubr.f32.gmra.mxu1 %v812_v44  ;;  %2791 = vmatpush3.msra.mxu0 %v1050_v42  ;;  %v1673_v42 = vld [vmem:[#allocation5 + $0x3e8] sm:$0xff] }
  0xa6   : > { %2848 = vmatpush3.msra.mxu1 %v1259_v43  ;;  %2792 = vmatprep.subr.mxu0 %v1049_v45  ;;  %v1463_v43 = vld [vmem:[#allocation5 + $0x358] sm:$0xff] }
  0xa7   : > { %2849 = vmatprep.subr.mxu1 %v1258_v46  ;;  %2793 = vmatpush3.msra.mxu0 %v1049_v45  ;;  %v1023_v45 = vld [vmem:[%s3525_s7 + $0x43] sm:$0xff] }
  0xa8   : > { %2708 = vmatprep.mubr.f32.mxu0 %v811_v41  ;;  %2767 = vmatprep.mubr.f32.mxu1 %v813_v47  ;;  %v3611_v41 = vld [vmem:[%s3525_s7 + $0x3c] sm:$0xff] }
  0xa9   : > { %2794 = vmatprep.subr.mxu0 %v1048_v48  ;;  %2850 = vmatpush3.msra.mxu1 %v1258_v46  ;;  %v3617_v46 = vld [vmem:[%s3525_s7 + $0x44] sm:$0xff] }
  0xaa   : > { %2709 = vmatmul.mubr.f32.gmra.mxu0 %v812_v44  ;;  %2768 = vmatmul.mubr.f32.gmra.mxu1 %v814_v49  ;;  %v1672_v44 = vld [vmem:[#allocation5 + $0x3e0] sm:$0xff] }
  0xab   : > { %2795 = vmatpush3.msra.mxu0 %v1048_v48  ;;  %2851 = vmatprep.subr.mxu1 %v1257_v50  ;;  %v3621_v48 = vld [vmem:[%s3525_s7 + $0x4c] sm:$0xff] }
  0xac   : > { %2796 = vmatprep.subr.mxu0 %v1047_v51  ;;  %2852 = vmatpush3.msra.mxu1 %v1257_v50  ;;  %v1671_v50 = vld [vmem:[#allocation5 + $0x3d8] sm:$0xff] }
  0xad   : > { %2797 = vmatpush3.msra.mxu0 %v1047_v51  ;;  %2853 = vmatprep.subr.mxu1 %v1256_v52  ;;  %v1461_v51 = vld [vmem:[#allocation5 + $0x348] sm:$0xff] }
  0xae   : > { %2711 = vmatprep.mubr.f32.mxu0 %v813_v47  ;;  %2770 = vmatprep.mubr.f32.mxu1 %v815_v53  ;;  %v1024_v47 = vld [vmem:[%s3525_s7 + $0x4b] sm:$0xff] }
  0xaf   : > { %2854 = vmatpush3.msra.mxu1 %v1256_v52  ;;  %2712 = vmatmul.mubr.f32.gmra.mxu0 %v814_v49  ;;  %v1462_v49 = vld [vmem:[#allocation5 + $0x350] sm:$0xff] }
  0xb0   : > { %2771 = vmatmul.mubr.f32.gmra.mxu1 %v816_v54  ;;  %2798 = vmatprep.subr.mxu0 %v1046_v55  ;;  %v1670_v52 = vld [vmem:[#allocation5 + $0x3d0] sm:$0xff] }
  0xb1   : > { %2855 = vmatprep.subr.mxu1 %v1255_v56  ;;  %2799 = vmatpush3.msra.mxu0 %v1046_v55  ;;  %v1026_v55 = vld [vmem:[%s3525_s7 + $0x5b] sm:$0xff] }
  0xb2   : > { %2856 = vmatpush3.msra.mxu1 %v1255_v56  ;;  %2800 = vmatprep.subr.mxu0 %v1045_v57  ;;  %v3631_v56 = vld [vmem:[%s3525_s7 + $0x5c] sm:$0xff] }
  0xb3   : > { %2857 = vmatprep.subr.mxu1 %v1254_v58  ;;  %2714 = vmatprep.mubr.f32.mxu0 %v815_v53  ;;  %v1025_v53 = vld [vmem:[%s3525_s7 + $0x53] sm:$0xff] }
  0xb4   : > { %2773 = vmatprep.mubr.f32.mxu1 %v817_v59  ;;  %2801 = vmatpush3.msra.mxu0 %v1045_v57  ;;  %v1460_v57 = vld [vmem:[#allocation5 + $0x340] sm:$0xff] }
  0xb5   : > { %2858 = vmatpush3.msra.mxu1 %v1254_v58  ;;  %2715 = vmatmul.mubr.f32.gmra.mxu0 %v816_v54  ;;  %v3627_v54 = vld [vmem:[%s3525_s7 + $0x54] sm:$0xff] }
  0xb6   : > { %2774 = vmatmul.mubr.f32.gmra.mxu1 %v818_v60  ;;  %2802 = vmatprep.subr.mxu0 %v1044_v61  ;;  %v1669_v58 = vld [vmem:[#allocation5 + $0x3c8] sm:$0xff] }
  0xb7   : > { %2859 = vmatprep.subr.mxu1 %v1253_v62  ;;  %2803 = vmatpush3.msra.mxu0 %v1044_v61  ;;  %v1027_v61 = vld [vmem:[%s3525_s7 + $0x63] sm:$0xff] }
  0xb8   : > { %2860 = vmatpush3.msra.mxu1 %v1253_v62  ;;  %2804 = vmatprep.subr.mxu0 %v1043_v63  ;;  %v3637_v62 = vld [vmem:[%s3525_s7 + $0x64] sm:$0xff] }
  0xb9   : > { %2861 = vmatprep.subr.mxu1 %v1252_v0  ;;  %2717 = vmatprep.mubr.f32.mxu0 %v817_v59  ;;  %v1459_v59 = vld [vmem:[#allocation5 + $0x338] sm:$0xff] }
  0xba   : > { %2776 = vmatprep.mubr.f32.mxu1 %v819_v1  ;;  %2805 = vmatpush3.msra.mxu0 %v1043_v63  ;;  %v1028_v63 = vld [vmem:[%s3525_s7 + $0x6b] sm:$0xff] }
  0xbb   : > { %2862 = vmatpush3.msra.mxu1 %v1252_v0  ;;  %2718 = vmatmul.mubr.f32.gmra.mxu0 %v818_v60  ;;  %v1668_v60 = vld [vmem:[#allocation5 + $0x3c0] sm:$0xff] }
  0xbc   : > { %2777 = vmatmul.mubr.f32.gmra.mxu1 %v820_v2  ;;  %2863 = vmatprep.subr.mxu1 %v1251_v3  ;;  %v3641_v0 = vld [vmem:[%s3525_s7 + $0x6c] sm:$0xff] }
  0xbd   : > { %2806 = vmatprep.subr.mxu0 %v1042_v4  ;;  %2864 = vmatpush3.msra.mxu1 %v1251_v3  ;;  %v1666_v3 = vld [vmem:[#allocation5 + $0x3b0] sm:$0xff] }
  0xbe   : > { %2807 = vmatpush3.msra.mxu0 %v1042_v4  ;;  %2865 = vmatprep.subr.mxu1 %v1250_v5  ;;  %v1029_v4 = vld [vmem:[%s3525_s7 + $0x73] sm:$0xff] }
  0xbf   : > { %2720 = vmatprep.mubr.f32.mxu0 %v819_v1  ;;  %2779 = vmatprep.mubr.f32.mxu1 %v821_v6  ;;  %v1667_v1 = vld [vmem:[#allocation5 + $0x3b8] sm:$0xff] }
  0xc0   : > { %2808 = vmatprep.subr.mxu0 %v1041_v7  ;;  %2866 = vmatpush3.msra.mxu1 %v1250_v5  ;;  %v3647_v5 = vld [vmem:[%s3525_s7 + $0x74] sm:$0xff] }
  0xc1   : > { %2721 = vmatmul.mubr.f32.gmra.mxu0 %v820_v2  ;;  %2780 = vmatmul.mubr.f32.gmra.mxu1 %v822_v8  ;;  %v1458_v2 = vld [vmem:[#allocation5 + $0x330] sm:$0xff] }
  0xc2   : > { %2809 = vmatpush3.msra.mxu0 %v1041_v7  ;;  %2867 = vmatprep.subr.mxu1 %v1249_v9  ;;  %v1030_v7 = vld [vmem:[%s3525_s7 + $0x7b] sm:$0xff] }
  0xc3   : > { %2810 = vmatprep.subr.mxu0 %v1040_v10  ;;  %2868 = vmatpush3.msra.mxu1 %v1249_v9  ;;  %v1665_v9 = vld [vmem:[#allocation5 + $0x3a8] sm:$0xff] }
  0xc4   : > { %2811 = vmatpush3.msra.mxu0 %v1040_v10  ;;  %2869 = vmatprep.subr.mxu1 %v1248_v11  ;;  %v1456_v10 = vld [vmem:[#allocation5 + $0x320] sm:$0xff] }
  0xc5   : > { %2723 = vmatprep.mubr.f32.mxu0 %v821_v6  ;;  %2782 = vmatprep.mubr.f32.mxu1 %v823_v12  ;;  %v1457_v6 = vld [vmem:[#allocation5 + $0x328] sm:$0xff] }
  0xc6   : > { %2812 = vmatprep.subr.mxu0 %v1039_v13  ;;  %2870 = vmatpush3.msra.mxu1 %v1248_v11  ;;  %v1664_v11 = vld [vmem:[#allocation5 + $0x3a0] sm:$0xff] }
  0xc7   : > { %2724 = vmatmul.mubr.f32.gmra.mxu0 %v822_v8  ;;  %2783 = vmatmul.mubr.f32.gmra.mxu1 %v824_v14  ;;  %v3651_v8 = vld [vmem:[%s3525_s7 + $0x7c] sm:$0xff] }
  0xc8   : > { %2813 = vmatpush3.msra.mxu0 %v1039_v13  ;;  %2871 = vmatprep.subr.mxu1 %v1247_v15  ;;  %v3657_v13 = vld [vmem:[%s3525_s7 + $0x84] sm:$0xff] }
  0xc9   : > { %2814 = vmatprep.subr.mxu0 %v1038_v16  ;;  %2872 = vmatpush3.msra.mxu1 %v1247_v15  ;;  %v1032_v15 = vld [vmem:[%s3525_s7 + $0x8b] sm:$0xff] }
  0xca   : > { %2726 = vmatprep.mubr.f32.mxu0 %v823_v12  ;;  %2873 = vmatprep.subr.mxu1 %v1246_v17  ;;  %v1031_v12 = vld [vmem:[%s3525_s7 + $0x83] sm:$0xff] }
  0xcb   : > { %2785 = vmatprep.mubr.f32.mxu1 %v825_v18  ;;  %2815 = vmatpush3.msra.mxu0 %v1038_v16  ;;  %v3661_v16 = vld [vmem:[%s3525_s7 + $0x8c] sm:$0xff] }
  0xcc   : > { %2874 = vmatpush3.msra.mxu1 %v1246_v17  ;;  %2727 = vmatmul.mubr.f32.gmra.mxu0 %v824_v14  ;;  %v1455_v14 = vld [vmem:[#allocation5 + $0x318] sm:$0xff]  ;;  %v1454_v18 = vld [vmem:[#allocation5 + $0x310] sm:$0xff] }
  0xcd   : > { %2786 = vmatmul.mubr.f32.gmra.mxu1 %v826_v19  ;;  %2816 = vmatprep.subr.mxu0 %v1037_v20  ;;  %v1663_v17 = vld [vmem:[#allocation5 + $0x398] sm:$0xff] }
  0xce   : > { %2875 = vmatprep.subr.mxu1 %v1245_v21  ;;  %2817 = vmatpush3.msra.mxu0 %v1037_v20  ;;  %v1033_v19 = vld [vmem:[%s3525_s7 + $0x93] sm:$0xff]  ;;  %v1662_v20 = vld [vmem:[#allocation5 + $0x390] sm:$0xff] }
  0xcf   : > { %2876 = vmatpush3.msra.mxu1 %v1245_v21  ;;  %2818 = vmatprep.subr.mxu0 %v1036_v22  ;;  %v3667_v21 = vld [vmem:[%s3525_s7 + $0x94] sm:$0xff] }
  0xd0   : > { %2877 = vmatprep.subr.mxu1 %v1244_v23  ;;  %2819 = vmatpush3.msra.mxu0 %v1036_v22  ;;  %v1034_v22 = vld [vmem:[%s3525_s7 + $0x9b] sm:$0xff] }
  0xd1   : > { %2820 = vmatprep.mubr.f32.mxu0 %v1017_v24  ;;  %2878 = vmatpush3.msra.mxu1 %v1244_v23  ;;  %v3671_v23 = vld [vmem:[%s3525_s7 + $0x9c] sm:$0xff] }
  0xd2   : > { %2879 = vmatprep.mubr.f32.mxu1 %v1225_v25  ;;  %2821 = vmatmul.mubr.f32.vlgmr.msra.gmra.mxu0 %v1018_v26  ;;  %v1453_v24 = vld [vmem:[#allocation5 + $0x308] sm:$0xff]  ;;  %v1452_v26 = vld [vmem:[#allocation5 + $0x300] sm:$0xff] }
  0xd3   : > { %2880 = vmatmul.mubr.f32.vlgmr.msra.gmra.mxu1 %v1226_v27  ;;  %2906 = vmatprep.subr.mxu0 %v1467_v28  ;;  %v1661_v25 = vld [vmem:[#allocation5 + $0x388] sm:$0xff]  ;;  %v1660_v27 = vld [vmem:[#allocation5 + $0x380] sm:$0xff] }
  0xd4   : > { %2823 = vmatprep.mubr.f32.mxu0 %v1019_v29  ;;  %2907 = vmatpush3.msra.mxu0 %v1467_v28  ;;  %v1641_v28 = vld [vmem:[%s3525_s7 + $0x25] sm:$0xff]  ;;  %v1642_v29 = vld [vmem:[%s3525_s7 + $0x2d] sm:$0xff] }
  0xd5   : > { %2882 = vmatprep.mubr.f32.mxu1 %v3597_v30  ;;  %2908 = vmatprep.subr.mxu0 %v1466_v31 }
  0xd6   : > { %2965 = vmatprep.subr.mxu1 %v1675_v32  ;;  %2824 = vmatmul.mubr.f32.gmra.mxu0 %v1020_v33  ;;  %v1882_v33 = vld [vmem:[#allocation5 + $0x470] sm:$0xff] }
  0xd7   : > { %2883 = vmatmul.mubr.f32.gmra.mxu1 %v3601_v34  ;;  %2909 = vmatpush3.msra.mxu0 %v1466_v31  ;;  %v1883_v31 = vld [vmem:[#allocation5 + $0x478] sm:$0xff] }
  0xd8   : > { %2966 = vmatpush3.msra.mxu1 %v1675_v32  ;;  %2910 = vmatprep.subr.mxu0 %v1465_v35  ;;  %v1643_v32 = vld [vmem:[%s3525_s7 + $0x35] sm:$0xff] }
  0xd9   : > { %2967 = vmatprep.subr.mxu1 %v1674_v36  ;;  %2911 = vmatpush3.msra.mxu0 %v1465_v35  ;;  %v1644_v35 = vld [vmem:[%s3525_s7 + $0x3d] sm:$0xff] }
  0xda   : > { %2826 = vmatprep.mubr.f32.mxu0 %v1021_v37  ;;  %2885 = vmatprep.mubr.f32.mxu1 %v3607_v38  ;;  %v1646_v37 = vld [vmem:[%s3525_s7 + $0x4d] sm:$0xff] }
  0xdb   : > { %2912 = vmatprep.subr.mxu0 %v1464_v39  ;;  %2968 = vmatpush3.msra.mxu1 %v1674_v36  ;;  %v1881_v36 = vld [vmem:[#allocation5 + $0x468] sm:$0xff] }
  0xdc   : > { %2827 = vmatmul.mubr.f32.gmra.mxu0 %v1022_v40  ;;  %2886 = vmatmul.mubr.f32.gmra.mxu1 %v3611_v41  ;;  %v1648_v40 = vld [vmem:[%s3525_s7 + $0x5d] sm:$0xff] }
  0xdd   : > { %2913 = vmatpush3.msra.mxu0 %v1464_v39  ;;  %2969 = vmatprep.subr.mxu1 %v1673_v42  ;;  %v1647_v39 = vld [vmem:[%s3525_s7 + $0x55] sm:$0xff] }
  0xde   : > { %2914 = vmatprep.subr.mxu0 %v1463_v43  ;;  %2970 = vmatpush3.msra.mxu1 %v1673_v42  ;;  %v1877_v42 = vld [vmem:[#allocation5 + $0x448] sm:$0xff] }
  0xdf   : > { %2915 = vmatpush3.msra.mxu0 %v1463_v43  ;;  %2971 = vmatprep.subr.mxu1 %v1672_v44  ;;  %v1649_v43 = vld [vmem:[%s3525_s7 + $0x65] sm:$0xff] }
  0xe0   : > { %2829 = vmatprep.mubr.f32.mxu0 %v1023_v45  ;;  %2888 = vmatprep.mubr.f32.mxu1 %v3617_v46  ;;  %v1876_v45 = vld [vmem:[#allocation5 + $0x440] sm:$0xff] }
  0xe1   : > { %2972 = vmatpush3.msra.mxu1 %v1672_v44  ;;  %2830 = vmatmul.mubr.f32.gmra.mxu0 %v1024_v47  ;;  %v1650_v44 = vld [vmem:[%s3525_s7 + $0x6d] sm:$0xff]  ;;  %v1651_v47 = vld [vmem:[%s3525_s7 + $0x75] sm:$0xff] }
  0xe2   : > { %2889 = vmatmul.mubr.f32.gmra.mxu1 %v3621_v48  ;;  %2916 = vmatprep.subr.mxu0 %v1462_v49 }
  0xe3   : > { %2973 = vmatprep.subr.mxu1 %v1671_v50  ;;  %2917 = vmatpush3.msra.mxu0 %v1462_v49  ;;  %v1874_v49 = vld [vmem:[#allocation5 + $0x430] sm:$0xff] }
  0xe4   : > { %2974 = vmatpush3.msra.mxu1 %v1671_v50  ;;  %2918 = vmatprep.subr.mxu0 %v1461_v51  ;;  %v1653_v50 = vld [vmem:[%s3525_s7 + $0x85] sm:$0xff] }
  0xe5   : > { %2975 = vmatprep.subr.mxu1 %v1670_v52  ;;  %2832 = vmatprep.mubr.f32.mxu0 %v1025_v53  ;;  %v1872_v53 = vld [vmem:[#allocation5 + $0x420] sm:$0xff] }
  0xe6   : > { %2891 = vmatprep.mubr.f32.mxu1 %v3627_v54  ;;  %2919 = vmatpush3.msra.mxu0 %v1461_v51  ;;  %v1873_v51 = vld [vmem:[#allocation5 + $0x428] sm:$0xff] }
  0xe7   : > { %2976 = vmatpush3.msra.mxu1 %v1670_v52  ;;  %2833 = vmatmul.mubr.f32.gmra.mxu0 %v1026_v55  ;;  %v1654_v52 = vld [vmem:[%s3525_s7 + $0x8d] sm:$0xff] }
  0xe8   : > { %2892 = vmatmul.mubr.f32.gmra.mxu1 %v3631_v56  ;;  %2920 = vmatprep.subr.mxu0 %v1460_v57  ;;  %v1871_v55 = vld [vmem:[#allocation5 + $0x418] sm:$0xff] }
  0xe9   : > { %2977 = vmatprep.subr.mxu1 %v1669_v58  ;;  %2921 = vmatpush3.msra.mxu0 %v1460_v57  ;;  %v1870_v57 = vld [vmem:[#allocation5 + $0x410] sm:$0xff] }
  0xea   : > { %2978 = vmatpush3.msra.mxu1 %v1669_v58  ;;  %2922 = vmatprep.subr.mxu0 %v1459_v59  ;;  %v1449_v58 = vld [vmem:[%s3525_s7 + $0xa4] sm:$0xff] }
  0xeb   : > { %2979 = vmatprep.subr.mxu1 %v1668_v60  ;;  %2835 = vmatprep.mubr.f32.mxu0 %v1027_v61  ;;  %v1658_v61 = vld [vmem:[%s3525_s7 + $0xad] sm:$0xff] }
  0xec   : > { %2894 = vmatprep.mubr.f32.mxu1 %v3637_v62  ;;  %2923 = vmatpush3.msra.mxu0 %v1459_v59  ;;  %v1657_v59 = vld [vmem:[%s3525_s7 + $0xa5] sm:$0xff] }
  0xed   : > { %2980 = vmatpush3.msra.mxu1 %v1668_v60  ;;  %2836 = vmatmul.mubr.f32.gmra.mxu0 %v1028_v63  ;;  %v1450_v60 = vld [vmem:[%s3525_s7 + $0xac] sm:$0xff] }
  0xee   : > { %2895 = vmatmul.mubr.f32.gmra.mxu1 %v3641_v0  ;;  %2981 = vmatprep.subr.mxu1 %v1667_v1 }
  0xef   : > { %2924 = vmatprep.subr.mxu0 %v1458_v2  ;;  %2982 = vmatpush3.msra.mxu1 %v1667_v1 }
  0xf0   : > { %2925 = vmatpush3.msra.mxu0 %v1458_v2  ;;  %2983 = vmatprep.subr.mxu1 %v1666_v3  ;;  %v1868_v2 = vld [vmem:[#allocation5 + $0x400] sm:$0xff] }
  0xf1   : > { %2838 = vmatprep.mubr.f32.mxu0 %v1029_v4  ;;  %2897 = vmatprep.mubr.f32.mxu1 %v3647_v5 }
  0xf2   : > { %2926 = vmatprep.subr.mxu0 %v1457_v6  ;;  %2984 = vmatpush3.msra.mxu1 %v1666_v3 }
  0xf3   : > { %2839 = vmatmul.mubr.f32.gmra.mxu0 %v1030_v7  ;;  %2898 = vmatmul.mubr.f32.gmra.mxu1 %v3651_v8  ;;  %v1859_v7 = vld [vmem:[%s3525_s7 + $0x76] sm:$0xff] }
  0xf4   : > { %2927 = vmatpush3.msra.mxu0 %v1457_v6  ;;  %2985 = vmatprep.subr.mxu1 %v1665_v9  ;;  %v1849_v6 = vld [vmem:[%s3525_s7 + $0x26] sm:$0xff] }
  0xf5   : > { %2928 = vmatprep.subr.mxu0 %v1456_v10  ;;  %2986 = vmatpush3.msra.mxu1 %v1665_v9 }
  0xf6   : > { %2929 = vmatpush3.msra.mxu0 %v1456_v10  ;;  %2987 = vmatprep.subr.mxu1 %v1664_v11  ;;  %v1850_v10 = vld [vmem:[%s3525_s7 + $0x2e] sm:$0xff] }
  0xf7   : > { %2841 = vmatprep.mubr.f32.mxu0 %v1031_v12  ;;  %2900 = vmatprep.mubr.f32.mxu1 %v3657_v13 }
  0xf8   : > { %2930 = vmatprep.subr.mxu0 %v1455_v14  ;;  %2988 = vmatpush3.msra.mxu1 %v1664_v11  ;;  %v1860_v11 = vld [vmem:[%s3525_s7 + $0x7e] sm:$0xff] }
  0xf9   : > { %2842 = vmatmul.mubr.f32.gmra.mxu0 %v1032_v15  ;;  %2901 = vmatmul.mubr.f32.gmra.mxu1 %v3661_v16 }
  0xfa   : > { %2931 = vmatpush3.msra.mxu0 %v1455_v14  ;;  %2989 = vmatprep.subr.mxu1 %v1663_v17  ;;  %v1861_v14 = vld [vmem:[%s3525_s7 + $0x86] sm:$0xff] }
  0xfb   : > { %2932 = vmatprep.subr.mxu0 %v1454_v18  ;;  %2990 = vmatpush3.msra.mxu1 %v1663_v17 }
  0xfc   : > { %2844 = vmatprep.mubr.f32.mxu0 %v1033_v19  ;;  %2991 = vmatprep.subr.mxu1 %v1662_v20  ;;  %v1862_v19 = vld [vmem:[%s3525_s7 + $0x8e] sm:$0xff] }
  0xfd   : > { %2903 = vmatprep.mubr.f32.mxu1 %v3667_v21  ;;  %2933 = vmatpush3.msra.mxu0 %v1454_v18  ;;  %v1852_v18 = vld [vmem:[%s3525_s7 + $0x3e] sm:$0xff] }
  0xfe   : > { %2992 = vmatpush3.msra.mxu1 %v1662_v20  ;;  %2845 = vmatmul.mubr.f32.gmra.mxu0 %v1034_v22  ;;  %v1863_v22 = vld [vmem:[%s3525_s7 + $0x96] sm:$0xff] }
  0xff   : > { %2904 = vmatmul.mubr.f32.gmra.mxu1 %v3671_v23  ;;  %2934 = vmatprep.subr.mxu0 %v1453_v24 }
 0x100   : > { %2993 = vmatprep.subr.mxu1 %v1661_v25  ;;  %2935 = vmatpush3.msra.mxu0 %v1453_v24 }
 0x101   : > { %2994 = vmatpush3.msra.mxu1 %v1661_v25  ;;  %2936 = vmatprep.subr.mxu0 %v1452_v26 }
 0x102   : > { %2995 = vmatprep.subr.mxu1 %v1660_v27  ;;  %2937 = vmatpush3.msra.mxu0 %v1452_v26 }
 0x103   : > { %2938 = vmatprep.mubr.f32.mxu0 %v3597_v30  ;;  %2996 = vmatpush3.msra.mxu1 %v1660_v27  ;;  %v1645_v30 = vld [vmem:[%s3525_s7 + $0x45] sm:$0xff]  ;;  %v1854_v27 = vld [vmem:[%s3525_s7 + $0x4e] sm:$0xff] }
 0x104   : > { %2997 = vmatprep.mubr.f32.mxu1 %v1641_v28  ;;  %2939 = vmatmul.mubr.f32.vlgmr.msra.gmra.mxu0 %v3601_v34  ;;  %v1880_v34 = vld [vmem:[#allocation5 + $0x460] sm:$0xff] }
 0x105   : > { %2998 = vmatmul.mubr.f32.vlgmr.msra.gmra.mxu1 %v1642_v29  ;;  %3024 = vmatprep.subr.mxu0 %v1883_v31  ;;  %v1864_v28 = vld [vmem:[%s3525_s7 + $0x9e] sm:$0xff] }
 0x106   : > { %2941 = vmatprep.mubr.f32.mxu0 %v3607_v38  ;;  %3025 = vmatpush3.msra.mxu0 %v1883_v31  ;;  %v1879_v38 = vld [vmem:[#allocation5 + $0x458] sm:$0xff] }
 0x107   : > { %3000 = vmatprep.mubr.f32.mxu1 %v1643_v32  ;;  %3026 = vmatprep.subr.mxu0 %v1882_v33  ;;  %v1865_v32 = vld [vmem:[%s3525_s7 + $0xa6] sm:$0xff] }
 0x108   : > { %3083 = vmatprep.subr.mxu1 %v1883_v31  ;;  %2942 = vmatmul.mubr.f32.gmra.mxu0 %v3611_v41  ;;  %v1878_v41 = vld [vmem:[#allocation5 + $0x450] sm:$0xff] }
 0x109   : > { %3001 = vmatmul.mubr.f32.gmra.mxu1 %v1644_v35  ;;  %3027 = vmatpush3.msra.mxu0 %v1882_v33 }
 0x10a   : > { %3099 = vmatpush3.msra.mxu1 %v1883_v31  ;;  %3028 = vmatprep.subr.mxu0 %v1881_v36  ;;  %v1855_v31 = vld [vmem:[%s3525_s7 + $0x56] sm:$0xff] }
 0x10b   : > { %3084 = vmatprep.subr.mxu1 %v1882_v33  ;;  %3029 = vmatpush3.msra.mxu0 %v1881_v36 }
 0x10c   : > { %2944 = vmatprep.mubr.f32.mxu0 %v3617_v46  ;;  %3003 = vmatprep.mubr.f32.mxu1 %v1645_v30  ;;  %v1875_v46 = vld [vmem:[#allocation5 + $0x438] sm:$0xff]  ;;  %v1856_v30 = vld [vmem:[%s3525_s7 + $0x5e] sm:$0xff] }
 0x10d   : > { %3100 = vmatpush3.msra.mxu1 %v1882_v33  ;;  %3030 = vmatprep.subr.mxu0 %v1880_v34 }
 0x10e   : > { %2945 = vmatmul.mubr.f32.gmra.mxu0 %v3621_v48  ;;  %3004 = vmatmul.mubr.f32.gmra.mxu1 %v1646_v37  ;;  %v1652_v48 = vld [vmem:[%s3525_s7 + $0x7d] sm:$0xff] }
 0x10f   : > { %3085 = vmatprep.subr.mxu1 %v1881_v36  ;;  %3031 = vmatpush3.msra.mxu0 %v1880_v34 }
 0x110   : > { %3101 = vmatpush3.msra.mxu1 %v1881_v36  ;;  %3032 = vmatprep.subr.mxu0 %v1879_v38 }
 0x111   : > { %3086 = vmatprep.subr.mxu1 %v1880_v34  ;;  %3033 = vmatpush3.msra.mxu0 %v1879_v38 }
 0x112   : > { %2947 = vmatprep.mubr.f32.mxu0 %v3627_v54  ;;  %3006 = vmatprep.mubr.f32.mxu1 %v1647_v39  ;;  %v1655_v54 = vld [vmem:[%s3525_s7 + $0x95] sm:$0xff]  ;;  %v1857_v39 = vld [vmem:[%s3525_s7 + $0x66] sm:$0xff] }
 0x113   : > { %3102 = vmatpush3.msra.mxu1 %v1880_v34  ;;  %2948 = vmatmul.mubr.f32.gmra.mxu0 %v3631_v56  ;;  %v1656_v56 = vld [vmem:[%s3525_s7 + $0x9d] sm:$0xff]  ;;  %v1866_v34 = vld [vmem:[%s3525_s7 + $0xae] sm:$0xff] }
 0x114   : > { %3007 = vmatmul.mubr.f32.gmra.mxu1 %v1648_v40  ;;  %3087 = vmatprep.subr.mxu1 %v1879_v38 }
 0x115   : > { %3034 = vmatprep.subr.mxu0 %v1878_v41  ;;  %3103 = vmatpush3.msra.mxu1 %v1879_v38 }
 0x116   : > { %3035 = vmatpush3.msra.mxu0 %v1878_v41  ;;  %3088 = vmatprep.subr.mxu1 %v1878_v41 }
 0x117   : > { %3036 = vmatprep.subr.mxu0 %v1877_v42  ;;  %2950 = vmatprep.mubr.f32.mxu0 %v3637_v62  ;;  %v1869_v62 = vld [vmem:[#allocation5 + $0x408] sm:$0xff] }
 0x118   : > { %3009 = vmatprep.mubr.f32.mxu1 %v1649_v43  ;;  %3104 = vmatpush3.msra.mxu1 %v1878_v41  ;;  %v1858_v41 = vld [vmem:[%s3525_s7 + $0x6e] sm:$0xff] }
 0x119   : > { %3037 = vmatpush3.msra.mxu0 %v1877_v42  ;;  %3010 = vmatmul.mubr.f32.gmra.mxu1 %v1650_v44 }
 0x11a   : > { %2951 = vmatmul.mubr.f32.gmra.mxu0 %v3641_v0  ;;  %3089 = vmatprep.subr.mxu1 %v1877_v42 }
 0x11b   : > { %3038 = vmatprep.subr.mxu0 %v1876_v45  ;;  %3105 = vmatpush3.msra.mxu1 %v1877_v42 }
 0x11c   : > { %3039 = vmatpush3.msra.mxu0 %v1876_v45  ;;  %3090 = vmatprep.subr.mxu1 %v1876_v45 }
 0x11d   : > { %3040 = vmatprep.subr.mxu0 %v1875_v46  ;;  %2953 = vmatprep.mubr.f32.mxu0 %v3647_v5 }
 0x11e   : > { %3012 = vmatprep.mubr.f32.mxu1 %v1651_v47  ;;  %3106 = vmatpush3.msra.mxu1 %v1876_v45 }
 0x11f   : > { %3041 = vmatpush3.msra.mxu0 %v1875_v46  ;;  %3013 = vmatmul.mubr.f32.gmra.mxu1 %v1652_v48 }
 0x120   : > { %2954 = vmatmul.mubr.f32.gmra.mxu0 %v3651_v8  ;;  %3091 = vmatprep.subr.mxu1 %v1875_v46 }
 0x121   : > { %3042 = vmatprep.subr.mxu0 %v1874_v49  ;;  %3107 = vmatpush3.msra.mxu1 %v1875_v46 }
 0x122   : > { %3043 = vmatpush3.msra.mxu0 %v1874_v49  ;;  %3092 = vmatprep.subr.mxu1 %v1874_v49 }
 0x123   : > { %2956 = vmatprep.mubr.f32.mxu0 %v3657_v13  ;;  %3015 = vmatprep.mubr.f32.mxu1 %v1653_v50  ;;  %v1851_v13 = vld [vmem:[%s3525_s7 + $0x36] sm:$0xff] }
 0x124   : > { %3108 = vmatpush3.msra.mxu1 %v1874_v49  ;;  %3044 = vmatprep.subr.mxu0 %v1873_v51 }
 0x125   : > { %2957 = vmatmul.mubr.f32.gmra.mxu0 %v3661_v16  ;;  %3016 = vmatmul.mubr.f32.gmra.mxu1 %v1654_v52 }
 0x126   : > { %3093 = vmatprep.subr.mxu1 %v1873_v51  ;;  %3045 = vmatpush3.msra.mxu0 %v1873_v51 }
 0x127   : > { %3109 = vmatpush3.msra.mxu1 %v1873_v51  ;;  %3046 = vmatprep.subr.mxu0 %v1872_v53 }
 0x128   : > { %3094 = vmatprep.subr.mxu1 %v1872_v53  ;;  %3047 = vmatpush3.msra.mxu0 %v1872_v53 }
 0x129   : > { %2959 = vmatprep.mubr.f32.mxu0 %v3667_v21  ;;  %3018 = vmatprep.mubr.f32.mxu1 %v1655_v54  ;;  %v1853_v21 = vld [vmem:[%s3525_s7 + $0x46] sm:$0xff] }
 0x12a   : > { %3110 = vmatpush3.msra.mxu1 %v1872_v53  ;;  %3048 = vmatprep.subr.mxu0 %v1871_v55 }
 0x12b   : > { %2960 = vmatmul.mubr.f32.gmra.mxu0 %v3671_v23  ;;  %3019 = vmatmul.mubr.f32.gmra.mxu1 %v1656_v56 }
 0x12c   : > { %3095 = vmatprep.subr.mxu1 %v1871_v55  ;;  %3049 = vmatpush3.msra.mxu0 %v1871_v55 }
 0x12d   : > { %3111 = vmatpush3.msra.mxu1 %v1871_v55  ;;  %3050 = vmatprep.subr.mxu0 %v1870_v57 }
 0x12e   : > { %3096 = vmatprep.subr.mxu1 %v1870_v57  ;;  %2962 = vmatprep.mubr.f32.mxu0 %v1449_v58  ;;  %v2586_v63 = vpop.f32.mrf.mxu0 }
 0x12f   : > { %3021 = vmatprep.mubr.f32.mxu1 %v1657_v59  ;;  %v2645_v0 = vpop.f32.mrf.mxu1  ;;  %3051 = vmatpush3.msra.mxu0 %v1870_v57 }
 0x130   : > { %3112 = vmatpush3.msra.mxu1 %v1870_v57  ;;  %v3711_v1 = vadd.f32 %v2645_v0, %v2586_v63  ;;  %2963 = vmatmul.mubr.f32.gmra.mxu0 %v1450_v60  ;;  %v357_v3 = vpop.f32.mrf.mxu0 }
 0x131   : > { %3022 = vmatmul.mubr.f32.gmra.mxu1 %v1658_v61  ;;  %v512_v4 = vpop.f32.mrf.mxu1  ;;  %3052 = vmatprep.subr.mxu0 %v1869_v62 }
 0x132   : > { %3097 = vmatprep.subr.mxu1 %v1869_v62  ;;  %v3713_v5 = vadd.f32 %v512_v4, %v357_v3  ;;  %3053 = vmatpush3.msra.mxu0 %v1869_v62  ;;  %v2589_v8 = vpop.f32.mrf.mxu0 }
 0x133   : > { %3113 = vmatpush3.msra.mxu1 %v1869_v62  ;;  %v2648_v9 = vpop.f32.mrf.mxu1  ;;  %3054 = vmatprep.subr.mxu0 %v1868_v2 }
 0x134   : > { %3098 = vmatprep.subr.mxu1 %v1868_v2  ;;  %v3719_v12 = vadd.f32 %v2648_v9, %v2589_v8  ;;  %3055 = vmatpush3.msra.mxu0 %v1868_v2  ;;  %v367_v15 = vpop.f32.mrf.mxu0 }
 0x135   : > { %3114 = vmatpush3.msra.mxu1 %v1868_v2  ;;  %v522_v16 = vpop.f32.mrf.mxu1  ;;  %3056 = vmatprep.mubr.f32.mxu0 %v1849_v6 }
 0x136   : > { %3071 = vmatprep.mubr.f32.mxu1 %v1859_v7  ;;  %v3723_v17 = vadd.f32 %v522_v16, %v367_v15  ;;  %3057 = vmatmul.mubr.f32.vlgmr.msra.gmra.mxu0 %v1850_v10 }
 0x137   : > { %3072 = vmatmul.mubr.f32.vlgmr.msra.gmra.mxu1 %v1860_v11  ;;  %3059 = vmatprep.mubr.f32.mxu0 %v1851_v13 }
 0x138   : > { %3074 = vmatprep.mubr.f32.mxu1 %v1861_v14  ;;  %v2592_v20 = vpop.f32.mrf.mxu0  ;;  %v2651_v23 = vpop.f32.mrf.mxu1 }
 0x139   : > { %v3729_v24 = vadd.f32 %v2651_v23, %v2592_v20 }
 0x13a   : > { %v377_v25 = vpop.f32.mrf.mxu0  ;;  %3060 = vmatmul.mubr.f32.gmra.mxu0 %v1852_v18  ;;  %v532_v26 = vpop.f32.mrf.mxu1 }
 0x13b   : > { %3075 = vmatmul.mubr.f32.gmra.mxu1 %v1862_v19  ;;  %3062 = vmatprep.mubr.f32.mxu0 %v1853_v21  ;;  %v3733_v29 = vadd.f32 %v532_v26, %v377_v25 }
 0x13c   : > { %3077 = vmatprep.mubr.f32.mxu1 %v1863_v22 }
 0x13d   : > { %v2595_v33 = vpop.f32.mrf.mxu0 }
 0x13e   : > { %v2654_v35 = vpop.f32.mrf.mxu1  ;;  %3063 = vmatmul.mubr.f32.gmra.mxu0 %v1854_v27 }
 0x13f   : > { %3078 = vmatmul.mubr.f32.gmra.mxu1 %v1864_v28  ;;  %v3737_v36 = vadd.f32 %v2654_v35, %v2595_v33  ;;  %3065 = vmatprep.mubr.f32.mxu0 %v1855_v31  ;;  %v387_v37 = vpop.f32.mrf.mxu0 }
 0x140   : > { %3080 = vmatprep.mubr.f32.mxu1 %v1865_v32  ;;  %v542_v38 = vpop.f32.mrf.mxu1 }
 0x141   : > { %v3742_v40 = vadd.f32 %v542_v38, %v387_v37 }
 0x142   : > { %3066 = vmatmul.mubr.f32.gmra.mxu0 %v1856_v30 }
 0x143   : > { %3081 = vmatmul.mubr.f32.gmra.mxu1 %v1866_v34  ;;  %3068 = vmatprep.mubr.f32.mxu0 %v1857_v39  ;;  %v2598_v42 = vpop.f32.mrf.mxu0 }
 0x144   : > { %v2657_v43 = vpop.f32.mrf.mxu1 }
 0x145   : > { %v3745_v44 = vadd.f32 %v2657_v43, %v2598_v42  ;;  %v397_v45 = vpop.f32.mrf.mxu0 }
 0x146   : > { %v552_v46 = vpop.f32.mrf.mxu1  ;;  %3069 = vmatmul.mubr.f32.gmra.mxu0 %v1858_v41 }
 0x147   : > { %v3747_v47 = vadd.f32 %v552_v46, %v397_v45 }
 0x149   : > { %v2601_v48 = vpop.f32.mrf.mxu0 }
 0x14a   : > { %v2660_v49 = vpop.f32.mrf.mxu1 }
 0x14b   : > { %v3749_v50 = vadd.f32 %v2660_v49, %v2601_v48  ;;  %v407_v51 = vpop.f32.mrf.mxu0 }
 0x14c   : > { %v562_v52 = vpop.f32.mrf.mxu1 }
 0x14d   : > { %v3751_v53 = vadd.f32 %v562_v52, %v407_v51 }
 0x14f   : > { %v2604_v54 = vpop.f32.mrf.mxu0  ;;  %v2663_v55 = vpop.f32.mrf.mxu1 }
 0x150   : > { %v3753_v56 = vadd.f32 %v2663_v55, %v2604_v54 }
 0x151   : > { %v417_v57 = vpop.f32.mrf.mxu0  ;;  %v572_v58 = vpop.f32.mrf.mxu1 }
 0x152   : > { %v3755_v59 = vadd.f32 %v572_v58, %v417_v57 }
 0x155   : > { %v2607_v60 = vpop.f32.mrf.mxu0  ;;  %v2666_v61 = vpop.f32.mrf.mxu1 }
 0x156   : > { %v3757_v62 = vadd.f32 %v2666_v61, %v2607_v60 }
 0x157   : > { %v427_v63 = vpop.f32.mrf.mxu0  ;;  %v582_v0 = vpop.f32.mrf.mxu1 }
 0x158   : > { %v3759_v2 = vadd.f32 %v582_v0, %v427_v63 }
 0x15a   : > { %v2610_v3 = vpop.f32.mrf.mxu0 }
 0x15b   : > { %v2669_v4 = vpop.f32.mrf.mxu1 }
 0x15c   : > { %v3761_v6 = vadd.f32 %v2669_v4, %v2610_v3  ;;  %v437_v7 = vpop.f32.mrf.mxu0 }
 0x15d   : > { %v592_v8 = vpop.f32.mrf.mxu1 }
 0x15e   : > { %v3763_v9 = vadd.f32 %v592_v8, %v437_v7 }
 0x160   : > { %v2704_v10 = vpop.f32.mrf.mxu0 }
 0x161   : > { %v2763_v11 = vpop.f32.mrf.mxu1  ;;  %v792_v13 = vadd.f32 %v2704_v10, %v3711_v1 }
 0x162   : > { %v702_v14 = vpop.f32.mrf.mxu0 }
 0x163   : > { %v910_v15 = vpop.f32.mrf.mxu1  ;;  %v3766_v16 = vadd.f32 %v2763_v11, %v792_v13  ;;  %v791_v18 = vadd.f32 %v702_v14, %v3713_v5 }
 0x164   : > { %v2707_v19 = vpop.f32.mrf.mxu0 }
 0x165   : > { %v2766_v20 = vpop.f32.mrf.mxu1  ;;  %v3769_v21 = vadd.f32 %v910_v15, %v791_v18  ;;  %v794_v22 = vadd.f32 %v2707_v19, %v3719_v12 }
 0x166   : > { %v712_v23 = vpop.f32.mrf.mxu0 }
 0x167   : > { %v920_v25 = vpop.f32.mrf.mxu1  ;;  %v3772_v26 = vadd.f32 %v2766_v20, %v794_v22  ;;  %v793_v27 = vadd.f32 %v712_v23, %v3723_v17 }
 0x169   : > { %v3775_v28 = vadd.f32 %v920_v25, %v793_v27 }
 0x16a   : > { %v2710_v1 = vpop.f32.mrf.mxu0  ;;  %v2769_v32 = vpop.f32.mrf.mxu1 }
 0x16b   : > { %v796_v31 = vadd.f32 %v2710_v1, %v3729_v24 }
 0x16c   : > { %v722_v33 = vpop.f32.mrf.mxu0  ;;  %v930_v30 = vpop.f32.mrf.mxu1 }
 0x16d   : > { %v3778_v5 = vadd.f32 %v2769_v32, %v796_v31  ;;  %v795_v35 = vadd.f32 %v722_v33, %v3733_v29 }
 0x16f   : > { %v3781_v34 = vadd.f32 %v930_v30, %v795_v35  ;;  %v2713_v12 = vpop.f32.mrf.mxu0 }
 0x170   : > { %v2772_v37 = vpop.f32.mrf.mxu1  ;;  %v798_v38 = vadd.f32 %v2713_v12, %v3737_v36 }
 0x171   : > { %v732_v39 = vpop.f32.mrf.mxu0 }
 0x172   : > { %v940_v17 = vpop.f32.mrf.mxu1  ;;  %v3784_v41 = vadd.f32 %v2772_v37, %v798_v38  ;;  %v797_v42 = vadd.f32 %v732_v39, %v3742_v40 }
 0x174   : > { %v3787_v24 = vadd.f32 %v940_v17, %v797_v42 }
 0x175   : > { %v2716_v43 = vpop.f32.mrf.mxu0 }
 0x176   : > { %v2775_v45 = vpop.f32.mrf.mxu1  ;;  %v800_v46 = vadd.f32 %v2716_v43, %v3745_v44 }
 0x177   : > { %v742_v29 = vpop.f32.mrf.mxu0 }
 0x178   : > { %v950_v48 = vpop.f32.mrf.mxu1  ;;  %v3790_v49 = vadd.f32 %v2775_v45, %v800_v46  ;;  %v799_v51 = vadd.f32 %v742_v29, %v3747_v47 }
 0x17a   : > { %v3793_v52 = vadd.f32 %v950_v48, %v799_v51 }
 0x17b   : > { %v2719_v36 = vpop.f32.mrf.mxu0 }
 0x17c   : > { %v2778_v54 = vpop.f32.mrf.mxu1  ;;  %v802_v55 = vadd.f32 %v2719_v36, %v3749_v50 }
 0x17d   : > { %v752_v57 = vpop.f32.mrf.mxu0 }
 0x17e   : > { %v960_v40 = vpop.f32.mrf.mxu1  ;;  %v3796_v58 = vadd.f32 %v2778_v54, %v802_v55  ;;  %v801_v60 = vadd.f32 %v752_v57, %v3751_v53 }
 0x180   : > { %v3799_v61 = vadd.f32 %v960_v40, %v801_v60 }
 0x181   : > { %v2722_v44 = vpop.f32.mrf.mxu0  ;;  %v2781_v0 = vpop.f32.mrf.mxu1 }
 0x182   : > { %v804_v63 = vadd.f32 %v2722_v44, %v3753_v56 }
 0x183   : > { %v762_v3 = vpop.f32.mrf.mxu0  ;;  %v970_v7 = vpop.f32.mrf.mxu1 }
 0x184   : > { %v3802_v47 = vadd.f32 %v2781_v0, %v804_v63  ;;  %v803_v4 = vadd.f32 %v762_v3, %v3755_v59 }
 0x186   : > { %v3805_v8 = vadd.f32 %v970_v7, %v803_v4 }
 0x187   : > { %v2725_v50 = vpop.f32.mrf.mxu0  ;;  %v2784_v11 = vpop.f32.mrf.mxu1 }
 0x188   : > { %v806_v10 = vadd.f32 %v2725_v50, %v3757_v62 }
 0x189   : > { %v772_v13 = vpop.f32.mrf.mxu0  ;;  %v980_v15 = vpop.f32.mrf.mxu1 }
 0x18a   : > { %v3808_v53 = vadd.f32 %v2784_v11, %v806_v10  ;;  %v805_v14 = vadd.f32 %v772_v13, %v3759_v2 }
 0x18c   : > { %v3811_v56 = vadd.f32 %v980_v15, %v805_v14  ;;  %v2728_v18 = vpop.f32.mrf.mxu0 }
 0x18d   : > { %v2787_v19 = vpop.f32.mrf.mxu1  ;;  %v808_v20 = vadd.f32 %v2728_v18, %v3761_v6 }
 0x18e   : > { %v782_v59 = vpop.f32.mrf.mxu0 }
 0x18f   : > { %v990_v22 = vpop.f32.mrf.mxu1  ;;  %v3814_v23 = vadd.f32 %v2787_v19, %v808_v20  ;;  %v807_v25 = vadd.f32 %v782_v59, %v3763_v9 }
 0x191   : > { %v3817_v62 = vadd.f32 %v990_v22, %v807_v25 }
 0x192   : > { %v2822_v27 = vpop.f32.mrf.mxu0 }
 0x193   : > { %v2881_v1 = vpop.f32.mrf.mxu1  ;;  %v1208_v31 = vadd.f32 %v2822_v27, %v3766_v16 }
 0x194   : > { %v1118_v2 = vpop.f32.mrf.mxu0 }
 0x195   : > { %v1326_v32 = vpop.f32.mrf.mxu1  ;;  %v3820_v33 = vadd.f32 %v2881_v1, %v1208_v31  ;;  %v1207_v35 = vadd.f32 %v1118_v2, %v3769_v21 }
 0x196   : > { %v2825_v30 = vpop.f32.mrf.mxu0 }
 0x197   : > { %v2884_v6 = vpop.f32.mrf.mxu1  ;;  %v3823_v12 = vadd.f32 %v1326_v32, %v1207_v35  ;;  %v1210_v37 = vadd.f32 %v2825_v30, %v3772_v26 }
 0x198   : > { %v1128_v38 = vpop.f32.mrf.mxu0 }
 0x199   : > { %v1336_v9 = vpop.f32.mrf.mxu1  ;;  %v3826_v39 = vadd.f32 %v2884_v6, %v1210_v37  ;;  %v1209_v17 = vadd.f32 %v1128_v38, %v3775_v28 }
 0x19b   : > { %v3829_v42 = vadd.f32 %v1336_v9, %v1209_v17 }
 0x19c   : > { %v2828_v16 = vpop.f32.mrf.mxu0  ;;  %v2887_v45 = vpop.f32.mrf.mxu1 }
 0x19d   : > { %v1212_v43 = vadd.f32 %v2828_v16, %v3778_v5 }
 0x19e   : > { %v1138_v46 = vpop.f32.mrf.mxu0  ;;  %v1346_v48 = vpop.f32.mrf.mxu1 }
 0x19f   : > { %v3832_v21 = vadd.f32 %v2887_v45, %v1212_v43  ;;  %v1211_v29 = vadd.f32 %v1138_v46, %v3781_v34 }
 0x1a1   : > { %v3835_v51 = vadd.f32 %v1346_v48, %v1211_v29  ;;  %v2831_v26 = vpop.f32.mrf.mxu0 }
 0x1a2   : > { %v2890_v36 = vpop.f32.mrf.mxu1  ;;  %v1214_v54 = vadd.f32 %v2831_v26, %v3784_v41 }
 0x1a3   : > { %v1148_v55 = vpop.f32.mrf.mxu0 }
 0x1a4   : > { %v1356_v28 = vpop.f32.mrf.mxu1  ;;  %v3838_v57 = vadd.f32 %v2890_v36, %v1214_v54  ;;  %v1213_v40 = vadd.f32 %v1148_v55, %v3787_v24 }
 0x1a6   : > { %v3841_v5 = vadd.f32 %v1356_v28, %v1213_v40 }
 0x1a7   : > { %v2834_v60 = vpop.f32.mrf.mxu0 }
 0x1a8   : > { %v2893_v44 = vpop.f32.mrf.mxu1  ;;  %v1216_v63 = vadd.f32 %v2834_v60, %v3790_v49 }
 0x1a9   : > { %v1158_v34 = vpop.f32.mrf.mxu0 }
 0x1aa   : > { %v1366_v0 = vpop.f32.mrf.mxu1  ;;  %v3844_v3 = vadd.f32 %v2893_v44, %v1216_v63  ;;  %v1215_v4 = vadd.f32 %v1158_v34, %v3793_v52 }
 0x1ac   : > { %4053 = vst [vmem:[#allocation16_spill] sm:$0xff] %v3844_v3  ;;  %v3847_v7 = vadd.f32 %v1366_v0, %v1215_v4 }
 0x1ad   : > { %v2837_v41 = vpop.f32.mrf.mxu0 }
 0x1ae   : > { %4054 = vst [vmem:[#allocation17_spill] sm:$0xff] %v3847_v7  ;;  %v2896_v50 = vpop.f32.mrf.mxu1  ;;  %v1218_v4 = vadd.f32 %v2837_v41, %v3796_v58 }
 0x1af   : > { %v1168_v10 = vpop.f32.mrf.mxu0 }
 0x1b0   : > { %v1376_v11 = vpop.f32.mrf.mxu1 }
 0x1b3   : > { %v2840_v13 = vpop.f32.mrf.mxu0  ;;  %v2899_v24 = vpop.f32.mrf.mxu1 }
 0x1b5   : > { %v1178_v14 = vpop.f32.mrf.mxu0  ;;  %v1386_v15 = vpop.f32.mrf.mxu1 }
 0x1b9   : > { %v2843_v18 = vpop.f32.mrf.mxu0  ;;  %v2902_v19 = vpop.f32.mrf.mxu1 }
 0x1bb   : > { %v1188_v20 = vpop.f32.mrf.mxu0  ;;  %v1396_v49 = vpop.f32.mrf.mxu1 }
 0x1be   : > { %v2846_v59 = vpop.f32.mrf.mxu0 }
 0x1bf   : > { %v2905_v22 = vpop.f32.mrf.mxu1 }
 0x1c0   : > { %v1198_v25 = vpop.f32.mrf.mxu0 }
 0x1c1   : > { %v1406_v27 = vpop.f32.mrf.mxu1 }
 0x1c4   : > { %v2940_v1 = vpop.f32.mrf.mxu0 }
 0x1c5   : > { %v2999_v52 = vpop.f32.mrf.mxu1 }
 0x1c6   : > { %v1534_v31 = vpop.f32.mrf.mxu0 }
 0x1c7   : > { %v1742_v2 = vpop.f32.mrf.mxu1 }
 0x1c8   : > { %v2943_v32 = vpop.f32.mrf.mxu0 }
 0x1c9   : > { %v3849_v35 = vpop.f32.mrf.mxu1 }
 0x1ca   : > { %v1544_v30 = vpop.f32.mrf.mxu0 }
 0x1cb   : > { %v3851_v6 = vpop.f32.mrf.mxu1 }
 0x1cc   : > { %4055 = vst [vmem:[#allocation18_spill] sm:$0xff] %v3851_v6 }
 0x1ce   : > { %v2946_v37 = vpop.f32.mrf.mxu0  ;;  %v3853_v38 = vpop.f32.mrf.mxu1 }
 0x1cf   : > { %4056 = vst [vmem:[#allocation19_spill] sm:$0xff] %v3853_v38  ;;  %v1224_v38 = vadd.f32 %v2846_v59, %v3814_v23 }
 0x1d0   : > { %v1554_v9 = vpop.f32.mrf.mxu0  ;;  %v3855_v17 = vpop.f32.mrf.mxu1 }
 0x1d1   : > { %4057 = vst [vmem:[#allocation20_spill] sm:$0xff] %v3855_v17  ;;  %v1221_v17 = vadd.f32 %v1188_v20, %v3811_v56  ;;  %v1432_v23 = vadd.f32 %v2905_v22, %v1224_v38  ;;  %v1625_v20 = vadd.f32 %v1544_v30, %v3829_v42  ;;  %v3897_v42 = vld [vmem:[%s4026_s2] ss:$0 sm:$0xff] }
 0x1d3   : > { %v2949_v16 = vpop.f32.mrf.mxu0  ;;  %v1429_v56 = vadd.f32 %v1396_v49, %v1221_v17 }
 0x1d4   : > { %v3857_v43 = vpop.f32.mrf.mxu1 }
 0x1d5   : > { %4058 = vst [vmem:[#allocation21_spill] sm:$0xff] %v3857_v43  ;;  %v1564_v45 = vpop.f32.mrf.mxu0  ;;  %v1426_v43 = vadd.f32 %v2896_v50, %v1218_v4 }
 0x1d6   : > { %v3859_v46 = vpop.f32.mrf.mxu1 }
 0x1d7   : > { %4059 = vst [vmem:[#allocation22_spill] sm:$0xff] %v3859_v46  ;;  %v1222_v46 = vadd.f32 %v2843_v18, %v3808_v53 }
 0x1d8   : > { %v4067_v30 = vld [vmem:[#allocation20_spill] sm:$0xff] }
 0x1d9   : > { %v3863_v48 = vpop.f32.mrf.mxu1 }
 0x1da   : > { %v3861_v29 = vpop.f32.mrf.mxu0  ;;  %4061 = vst [vmem:[#allocation24_spill] sm:$0xff] %v3863_v48 }
 0x1db   : > { %4060 = vst [vmem:[#allocation23_spill] sm:$0xff] %v3861_v29  ;;  %v3867_v36 = vpop.f32.mrf.mxu1  ;;  %v1217_v29 = vadd.f32 %v1168_v10, %v3799_v61  ;;  %v1223_v61 = vadd.f32 %v1198_v25, %v3817_v62  ;;  %v1624_v10 = vadd.f32 %v2940_v1, %v3820_v33  ;;  %v1628_v62 = vadd.f32 %v2946_v37, %v3832_v21 }
 0x1dc   : > { %v3865_v26 = vpop.f32.mrf.mxu0  ;;  %4063 = vst [vmem:[#allocation26_spill] sm:$0xff] %v3867_v36  ;;  %v1220_v36 = vadd.f32 %v2840_v13, %v3802_v47  ;;  %v1627_v33 = vadd.f32 %v1554_v9, %v3835_v51  ;;  %v1629_v25 = vadd.f32 %v1564_v45, %v3841_v5  ;;  %v4068_v37 = vld [vmem:[#allocation21_spill] sm:$0xff] }
 0x1dd   : > { %4062 = vst [vmem:[#allocation25_spill] sm:$0xff] %v3865_v26  ;;  %v1219_v26 = vadd.f32 %v1178_v14, %v3805_v8  ;;  %v1425_v6 = vadd.f32 %v1376_v11, %v1217_v29  ;;  %v1430_v14 = vadd.f32 %v2902_v19, %v1222_v46  ;;  %v1626_v11 = vadd.f32 %v2943_v32, %v3826_v39  ;;  %v4066_v32 = vld [vmem:[#allocation19_spill] sm:$0xff] }
 0x1de   : > { %v1428_v13 = vadd.f32 %v2899_v24, %v1220_v36  ;;  %v1431_v24 = vadd.f32 %v1406_v27, %v1223_v61  ;;  %v1836_v5 = vadd.f32 %v4066_v32, %v1628_v62  ;;  %v4069_v46 = vld [vmem:[#allocation22_spill] sm:$0xff] }
 0x1df   : > { %v3014_v55 = vpop.f32.mrf.mxu1  ;;  %v1427_v8 = vadd.f32 %v1386_v15, %v1219_v26  ;;  %v1832_v15 = vadd.f32 %v2999_v52, %v1624_v10  ;;  %v1834_v51 = vadd.f32 %v3849_v35, %v1626_v11  ;;  %v3909_v29 = vadd.f32 %v4069_v46, %v1629_v25 }
 0x1e0   : > { %v2955_v54 = vpop.f32.mrf.mxu0 }
 0x1e1   : > { %v1792_v40 = vpop.f32.mrf.mxu1  ;;  %v1634_v47 = vadd.f32 %v2955_v54, %v1426_v43 }
 0x1e2   : > { %v1584_v28 = vpop.f32.mrf.mxu0 }
 0x1e3   : > { %v1633_v18 = vadd.f32 %v1584_v28, %v1425_v6  ;;  %v1842_v59 = vadd.f32 %v3014_v55, %v1634_v47  ;;  %v1835_v6 = vadd.f32 %v4067_v30, %v1627_v33 }
 0x1e5   : > { %v2958_v60 = vpop.f32.mrf.mxu0  ;;  %v3017_v44 = vpop.f32.mrf.mxu1 }
 0x1e6   : > { %v1636_v49 = vadd.f32 %v2958_v60, %v1428_v13 }
 0x1e7   : > { %v1594_v63 = vpop.f32.mrf.mxu0  ;;  %v1802_v34 = vpop.f32.mrf.mxu1 }
 0x1e8   : > { %v1635_v1 = vadd.f32 %v1594_v63, %v1427_v8 }
 0x1ea   : > { %v1843_v26 = vadd.f32 %v1802_v34, %v1635_v1 }
 0x1eb   : > { %v2961_v0 = vpop.f32.mrf.mxu0  ;;  %v3020_v7 = vpop.f32.mrf.mxu1 }
 0x1ec   : > { %v1638_v22 = vadd.f32 %v2961_v0, %v1430_v14  ;;  %v4070_v14 = vld [vmem:[#allocation16_spill] sm:$0xff] }
 0x1ed   : > { %v3871_v3 = vpop.f32.mrf.mxu0  ;;  %v3873_v48 = vpop.f32.mrf.mxu1 }
 0x1ee   : > { %4064 = vst [vmem:[#allocation27_spill] sm:$0xff] %v3873_v48  ;;  %v1623_v48 = vadd.f32 %v1534_v31, %v3823_v12  ;;  %v1630_v12 = vadd.f32 %v2949_v16, %v3838_v57  ;;  %v1841_v57 = vadd.f32 %v1792_v40, %v1633_v18  ;;  %v4065_v31 = vld [vmem:[#allocation18_spill] sm:$0xff]  ;;  %v1846_v36 = vadd.f32 %v3020_v7, %v1638_v22 }
 0x1ef   : > { %v1637_v0 = vadd.f32 %v3871_v3, %v1429_v56  ;;  %v4071_v3 = vld [vmem:[#allocation23_spill] sm:$0xff] }
 0x1f0   : > { %v2964_v58 = vpop.f32.mrf.mxu0  ;;  %v1831_v19 = vadd.f32 %v1742_v2, %v1623_v48  ;;  %v1833_v2 = vadd.f32 %v4065_v31, %v1625_v20  ;;  %v3904_v38 = vadd.f32 %v4068_v37, %v1630_v12  ;;  %v1844_v48 = vadd.f32 %v3017_v44, %v1636_v49 }
 0x1f1   : > { %v3880_v41 = vpop.f32.mrf.mxu1  ;;  %v1640_v4 = vadd.f32 %v2964_v58, %v1432_v23  ;;  %v1632_v58 = vadd.f32 %v4071_v3, %v4070_v14 }
 0x1f2   : > { %v1614_v53 = vpop.f32.mrf.mxu0 }
 0x1f3   : > { %v3885_v50 = vpop.f32.mrf.mxu1  ;;  %v1639_v56 = vadd.f32 %v1614_v53, %v1431_v24  ;;  %v1848_v53 = vadd.f32 %v3880_v41, %v1640_v4 }
 0x1f5   : > { %v1847_v31 = vadd.f32 %v3885_v50, %v1639_v56 }
 0x1f6   : > { %v3058_v39 = vpop.f32.mrf.mxu0 }
 0x1f7   : > { %v3073_v21 = vpop.f32.mrf.mxu1  ;;  %v2040_v27 = vadd.f32 %v3058_v39, %v1832_v15 }
 0x1f8   : > { %v2050_v52 = vadd.f32 %v3073_v21, %v1842_v59  ;;  %v1950_v9 = vpop.f32.mrf.mxu0 }
 0x1f9   : > { %v2000_v17 = vpop.f32.mrf.mxu1  ;;  %v2065_v16 = vadd.f32 %v3897_v42, %v2040_v27  ;;  %v2039_v45 = vadd.f32 %v1950_v9, %v1831_v19  ;;  %v4072_v19 = vld [vmem:[#allocation27_spill] sm:$0xff]  ;;  %v4074_v27 = vld [vmem:[#allocation25_spill] sm:$0xff] }
 0x1fa   : > { %v2075_v43 = vadd.f32 %v3897_v42, %v2050_v52  ;;  %v2049_v35 = vadd.f32 %v2000_v17, %v1841_v57  ;;  %v3061_v54 = vpop.f32.mrf.mxu0  ;;  %v1845_v59 = vadd.f32 %v4072_v19, %v1637_v0  ;;  %v4073_v57 = vld [vmem:[#allocation17_spill] sm:$0xff] }
 0x1fb   : > { %v3076_v55 = vpop.f32.mrf.mxu1  ;;  %v2083_v28 = vmax.f32 %v2065_v16, 0.0  ;;  %v2064_v60 = vadd.f32 %v3897_v42, %v2039_v45  ;;  %v2042_v61 = vadd.f32 %v3061_v54, %v1834_v51  ;;  %v1631_v52 = vadd.f32 %v4074_v27, %v4073_v57 }
 0x1fc   : > { %v2093_v40 = vmax.f32 %v2075_v43, 0.0  ;;  %v2074_v63 = vadd.f32 %v3897_v42, %v2049_v35  ;;  %v2052_v10 = vadd.f32 %v3076_v55, %v1844_v48  ;;  %v1960_v47 = vpop.f32.mrf.mxu0  ;;  %v4075_v48 = vld [vmem:[#allocation24_spill] sm:$0xff] }
 0x1fd   : > { %v2010_v13 = vpop.f32.mrf.mxu1  ;;  %2101 = vst [vmem:[%s3916_s26 + $0x8] sm:$0xff] %v2083_v28  ;;  %v2082_v7 = vmax.f32 %v2064_v60, 0.0  ;;  %v2041_v34 = vadd.f32 %v1960_v47, %v1833_v2  ;;  %v2067_v23 = vadd.f32 %v3897_v42, %v2042_v61 }
 0x1fe   : > { %2111 = vst [vmem:[%s3916_s26 + $0x58] sm:$0xff] %v2093_v40  ;;  %v2092_v44 = vmax.f32 %v2074_v63, 0.0  ;;  %v2051_v8 = vadd.f32 %v2010_v13, %v1843_v26  ;;  %v2077_v11 = vadd.f32 %v3897_v42, %v2052_v10  ;;  %v3064_v18 = vpop.f32.mrf.mxu0  ;;  %v1840_v26 = vadd.f32 %v4075_v48, %v1632_v58 }
 0x1ff   : > { %v3079_v20 = vpop.f32.mrf.mxu1  ;;  %2100 = vst [vmem:[%s3916_s26] sm:$0xff] %v2082_v7  ;;  %v2066_v62 = vadd.f32 %v3897_v42, %v2041_v34  ;;  %v2044_v12 = vadd.f32 %v3064_v18, %v1836_v5  ;;  %v2085_v24 = vmax.f32 %v2067_v23, 0.0 }
 0x200   : > { %2110 = vst [vmem:[%s3916_s26 + $0x50] sm:$0xff] %v2092_v44  ;;  %v2076_v33 = vadd.f32 %v3897_v42, %v2051_v8  ;;  %v2054_v15 = vadd.f32 %v3079_v20, %v1846_v36  ;;  %v2095_v25 = vmax.f32 %v2077_v11, 0.0  ;;  %v1970_v49 = vpop.f32.mrf.mxu0  ;;  %v4076_v36 = vld [vmem:[#allocation26_spill] sm:$0xff] }
 0x201   : > { %v2020_v1 = vpop.f32.mrf.mxu1  ;;  %v2084_v22 = vmax.f32 %v2066_v62, 0.0  ;;  %v2069_v21 = vadd.f32 %v3897_v42, %v2044_v12  ;;  %2103 = vst [vmem:[%s3916_s26 + $0x18] sm:$0xff] %v2085_v24  ;;  %v2043_v41 = vadd.f32 %v1970_v49, %v1835_v6  ;;  %v1839_v54 = vadd.f32 %v4076_v36, %v1631_v52 }
 0x202   : > { %v2094_v39 = vmax.f32 %v2076_v33, 0.0  ;;  %v2079_v51 = vadd.f32 %v3897_v42, %v2054_v15  ;;  %2113 = vst [vmem:[%s3916_s26 + $0x68] sm:$0xff] %v2095_v25  ;;  %v2053_v2 = vadd.f32 %v2020_v1, %v1845_v59  ;;  %v3067_v32 = vpop.f32.mrf.mxu0 }
 0x203   : > { %v3082_v5 = vpop.f32.mrf.mxu1  ;;  %2102 = vst [vmem:[%s3916_s26 + $0x10] sm:$0xff] %v2084_v22  ;;  %v2087_v30 = vmax.f32 %v2069_v21, 0.0  ;;  %v2046_v9 = vadd.f32 %v3067_v32, %v3904_v38  ;;  %v2068_v16 = vadd.f32 %v3897_v42, %v2043_v41 }
 0x204   : > { %2112 = vst [vmem:[%s3916_s26 + $0x60] sm:$0xff] %v2094_v39  ;;  %v2097_v37 = vmax.f32 %v2079_v51, 0.0  ;;  %v2056_v17 = vadd.f32 %v3082_v5, %v1848_v53  ;;  %v2078_v50 = vadd.f32 %v3897_v42, %v2053_v2  ;;  %v1980_v43 = vpop.f32.mrf.mxu0 }
 0x205   : > { %v2030_v45 = vpop.f32.mrf.mxu1  ;;  %2105 = vst [vmem:[%s3916_s26 + $0x28] sm:$0xff] %v2087_v30  ;;  %v2071_v6 = vadd.f32 %v3897_v42, %v2046_v9  ;;  %v2045_v46 = vadd.f32 %v1980_v43, %v3909_v29  ;;  %v2086_v55 = vmax.f32 %v2068_v16, 0.0 }
 0x206   : > { %2115 = vst [vmem:[%s3916_s26 + $0x78] sm:$0xff] %v2097_v37  ;;  %v2081_v35 = vadd.f32 %v3897_v42, %v2056_v17  ;;  %v2055_v38 = vadd.f32 %v2030_v45, %v1847_v31  ;;  %v2096_v28 = vmax.f32 %v2078_v50, 0.0  ;;  %v3070_v40 = vpop.f32.mrf.mxu0 }
 0x207   : > { %v2089_v60 = vmax.f32 %v2071_v6, 0.0  ;;  %v2070_v0 = vadd.f32 %v3897_v42, %v2045_v46  ;;  %2104 = vst [vmem:[%s3916_s26 + $0x20] sm:$0xff] %v2086_v55  ;;  %v2048_v4 = vadd.f32 %v3070_v40, %v1840_v26 }
 0x208   : > { %v2099_v63 = vmax.f32 %v2081_v35, 0.0  ;;  %v2080_v29 = vadd.f32 %v3897_v42, %v2055_v38  ;;  %2114 = vst [vmem:[%s3916_s26 + $0x70] sm:$0xff] %v2096_v28  ;;  %v1990_v61 = vpop.f32.mrf.mxu0 }
 0x209   : > { %2107 = vst [vmem:[%s3916_s26 + $0x38] sm:$0xff] %v2089_v60  ;;  %v2088_v10 = vmax.f32 %v2070_v0, 0.0  ;;  %v2047_v13 = vadd.f32 %v1990_v61, %v1839_v54  ;;  %v2073_v7 = vadd.f32 %v3897_v42, %v2048_v4 }
 0x20a   : > { %2117 = vst [vmem:[%s3916_s26 + $0x88] sm:$0xff] %v2099_v63  ;;  %v2098_v47 = vmax.f32 %v2080_v29, 0.0 }
 0x20b   : > { %2106 = vst [vmem:[%s3916_s26 + $0x30] sm:$0xff] %v2088_v10  ;;  %v2072_v44 = vadd.f32 %v3897_v42, %v2047_v13  ;;  %v2091_v34 = vmax.f32 %v2073_v7, 0.0 }
 0x20c   : > { %2116 = vst [vmem:[%s3916_s26 + $0x80] sm:$0xff] %v2098_v47 }
 0x20d   : > { %v2090_v8 = vmax.f32 %v2072_v44, 0.0  ;;  %2109 = vst [vmem:[%s3916_s26 + $0x48] sm:$0xff] %v2091_v34 }
 0x20f   : > { %2108 = vst [vmem:[%s3916_s26 + $0x40] sm:$0xff] %v2090_v8 }
 0x210   : > { %3282 = shalt.err (!%p3279_p5)
}
 0x211   : > { %s3283_s25 = scalar_lea.hbm %s3967_s6, 2304  ;;  %s3287_s7 = scalar_lea.hbm %s4027_s3, 9216 }
 0x212   : > { %p3284_p4 = scmp.ne.s32.totalorder %s3967_s6, %s3283_s25  ;;  %p3288_p9 = scmp.lt.s32.totalorder %s3967_s6, %s4027_s3 }
 0x213   : > { %p3289_p10 = scmp.lt.s32.totalorder %s3287_s7, %s3283_s25 }
 0x214   : > { %p3285_p6 = pnand %p3284_p4, %p3489_p11 }
 0x215   : > { %p3290_p12 = por %p3289_p10, %p3288_p9 }
 0x216   : > { %p3286_p7 = pneg %p3285_p6 }
 0x218   : > { %p3291_p1 = pnand %p3290_p12, %p3286_p7 }
 0x21a   : > { %3294 = shalt.err (!%p3291_p1)
}
 0x21b   : > { %s3376_s24 = smov 128   ;;  %s3377_s26 = smov 8  }
 0x21c   : > { %3128 = dma.vmem_to_hbm [thread:$0]  (%p3489_p11), %s3969_s21, 2304, %s3967_s6, %s2119_s10, %s3376_s24, %s3376_s24, %s3377_s26  }
 0x21d PF: > { %s4077_s8 = sld [smem:[#allocation11_spill]]  ;;  %p3145_p8 = scmp.ge.s32.totalorder %s3369_s19, 2 }
 0x21e   : > { %s4078_s20 = sld [smem:[#allocation13_spill]] }
 0x223   : > { %s2149_s16 = sand.u32 1, %s4077_s8  }
 0x224   : > { %p4079_p13 = scmp.ne.s32.totalorder %s4078_s20, 0  ;;  %s2150_s15 = scalar_lea.sflag [#allocation4], %s2149_s16 }
 0x226   : > { %p3139_p0 = pnand %p3145_p8, %p4079_p13 }
 0x228   : > { %p3140_p2 = pneg %p3139_p0 }
 0x22a   : > { %3336 = dma.done.wait (%p3140_p2), %s2150_s15, 2304  }
 0x22b   : > { %3338 = vsyncadd (%p3140_p2), %s2150_s15, 4294964992  ;;  %s20_s19 = sadd.s32 1, %s3369_s19   ;;  %s4080_s16 = sld [smem:[#allocation12_spill]] }
 0x22c   : > { %p17_p3 = scmp.ge.s32.totalorder %s20_s19, 6   ;;  %s4081_s11 = sld [smem:[#allocation14_spill]] }
 0x22d   : > { %s4082_s18 = sld [smem:[#allocation15_spill]]  ;;  %s4083_s12 = smov %s3345_s13 }
 0x22e   : > { %s4084_s13 = smov %s3349_s14  ;;  %s4085_s14 = smov %s3506_s23 }
 0x22f   : > { %s4086_s15 = smov %s3361_s17  ;;  %19 = sbr.rel (!%p17_p3) target bundleno = 10 (0xa), region = 89 }
 0x232   : > { %s4087_s17 = smov %s4081_s11 }
 0x234   :  { %2155 = vsyncpa [#allocation3], 1 }
 0x235   :  { %2157 = vsyncpa [#allocation3 + $0x1], 1 }
 0x236   :  { %2158 = vsyncpa [#allocation6], 1 }
 0x237   :  { %2159 = vsyncpa [#allocation4], 1 }
 0x238   :  { %2161 = vsyncpa [#allocation4 + $0x1], 1 }

</bundles_post_ra>
